<compile_context>
chip_gen: v7x
topology: tpu7x:2x2x1
jax: 0.10.0
libtpu: 0.0.40
codegen_flags: <defaults>
</compile_context>

<pallas_src>
import jax
import jax.numpy as jnp
import numpy as np
from jax.experimental import pallas as pl
from jax.experimental.pallas import tpu as pltpu


def _round_up(x, m):
    return (x + m - 1) // m * m


# ===================== host-side (NumPy) one-time weight packing =====================
def _bn_fold_np(gamma, beta, rm, rv, eps=1e-5):
    s = gamma / np.sqrt(rv + eps)
    return s, beta - rm * s


def _subpixel_weight_np(W_pt, stride, pad):
    """PyTorch ConvTranspose2d weight (Cin, Cout, k, k) -> stride-1 depth-to-space
    weight w6[u, v, ci, ry, rx, co] of shape (m, m, Cin, s, s, Cout)."""
    Cin, Cout, k, _ = W_pt.shape
    s, p = stride, pad
    n = -(-k // s)                                            # ceil(k / s)
    c = [(((r - p) % s) + p - r) // s for r in range(s)]      # per-phase row offset
    cmin, cmax = min(c), max(c)
    m = n + (cmax - cmin)                                     # unified window size
    w6 = np.zeros((m, m, Cin, s, s, Cout), np.float32)
    for ry in range(s):
        nry = (k - ry + s - 1) // s
        dy = c[ry] - cmin
        for rx in range(s):
            nrx = (k - rx + s - 1) // s
            dx = c[rx] - cmin
            sub = W_pt[:, :, ry::s, rx::s][:, :, ::-1, ::-1]  # flip kernel taps
            sub = np.transpose(sub, (2, 3, 0, 1))             # (nry, nrx, Cin, Cout)
            w6[n - nry + dy:n + dy, n - nrx + dx:n + dx, :,
               (ry - p) % s, (rx - p) % s, :] = sub
    return w6, n, m, cmin, cmax


def _subpixel_pack(W_pt, stride, pad, H):
    """Sub-pixel weight + all static geometry for a square H x H input."""
    Cin, Cout, k, _ = W_pt.shape
    s = stride
    OH = (H - 1) * s - 2 * pad + k
    assert (k - 2 * pad) % s == 0, "sub-pixel path requires OH % stride == 0"
    Q = OH // s
    w6, n, m, cmin, cmax = _subpixel_weight_np(W_pt, s, pad)
    pad_lo = max(0, n - 1 - cmin)
    pad_hi = max(0, Q + cmax - H)
    start = cmin - n + 1 + pad_lo
    Hp = H + pad_lo + pad_hi
    assert start >= 0 and start + (m - 1) + Q <= Hp
    geom = dict(OH=OH, Q=Q, m=m, s=s, pad_lo=pad_lo, Hp=Hp, Cin=Cin, Cout=Cout)
    return w6, geom


def _rowband_weight_np(w6f, geom, out_order):
    """Pack the depth-to-space weight into m row-band matmul weights.

    Wrow[u] has shape (Wp*Cin, N): it consumes one full padded input image row
    (x-major, channel-minor) and produces, for every output tile column tx, the
    s*s*Cout sub-pixel outputs of that tile.  Column order:
      'ry_tx_rx_co' -> ((ry*Q + tx)*s + rx)*Cout + co   (NHWC output rows)
      'co_ry_tx_rx' -> ((co*s + ry)*Q + tx)*s + rx      (NCHW output planes)
    """
    m, Q, Wp = geom["m"], geom["Q"], geom["Hp"]               # square: Wp == Hp
    s, Cin, Cout = geom["s"], geom["Cin"], geom["Cout"]
    start = 0  # x-window base inside the padded row (same derivation as y: start == geom start)
    start = geom.get("start", 0)
    N = s * Q * s * Cout
    Wrow = np.zeros((m, Wp * Cin, N), np.float32)
    for u in range(m):
        for tx in range(Q):
            for v in range(m):
                xin = start + tx + v
                if not 0 <= xin < Wp:
                    continue
                blk = w6f[u, v]                               # (Cin, s, s, Cout)
                r0 = xin * Cin
                if out_order == "ry_tx_rx_co":
                    for ry in range(s):
                        c0 = (ry * Q + tx) * s * Cout
                        Wrow[u, r0:r0 + Cin, c0:c0 + s * Cout] += blk[:, ry].reshape(Cin, s * Cout)
                elif out_order == "co_ry_tx_rx":
                    for co in range(Cout):
                        for ry in range(s):
                            c0 = ((co * s + ry) * Q + tx) * s
                            Wrow[u, r0:r0 + Cin, c0:c0 + s] += blk[:, ry, :, co]
                else:
                    raise ValueError(out_order)
    return Wrow


def pack_generator_params(params, *, nz, ngf, nc, image_size,
                          normalization=True, compute_dtype=jnp.bfloat16):
    """One-time host-side weight prep: BN fold, sub-pixel rearrangement, row-band
    packing, K/N padding, dtype cast, bias tiling.  Zero XLA ops per forward."""
    f32 = np.float32
    p = {k: np.asarray(v, f32) for k, v in params.items()}
    k1 = image_size // 8
    C1, C2 = 2 * ngf, ngf

    if normalization:
        s1, t1 = _bn_fold_np(p["bn1_gamma"], p["bn1_beta"], p["bn1_rm"], p["bn1_rv"])
        s2, t2 = _bn_fold_np(p["bn2_gamma"], p["bn2_beta"], p["bn2_rm"], p["bn2_rv"])
    else:
        s1, t1 = np.ones(C1, f32), np.zeros(C1, f32)
        s2, t2 = np.ones(C2, f32), np.zeros(C2, f32)

    # ---- layer 1: ConvTranspose over a 1x1 input == dense layer, cols (ky, kx, co)
    w1 = np.transpose(p["w1"], (0, 2, 3, 1)).reshape(nz, k1 * k1 * C1)
    w1 = w1 * np.tile(s1, k1 * k1)[None, :]
    b1 = np.tile(t1, k1 * k1)

    # ---- layer 2: ConvTranspose k=6 s=4 p=1 over the k1 x k1 image (NHWC-row cols)
    w6_2, g2 = _subpixel_pack(p["w2"], 4, 1, k1)
    g2["start"] = g2.get("start", 0)
    w6_2 = w6_2 * s2.reshape(1, 1, 1, 1, 1, C2)               # fold BN2 scale
    w2row = _rowband_weight_np(w6_2, g2, "ry_tx_rx_co")
    b2 = np.tile(t2, g2["s"] * g2["Q"] * g2["s"])

    # ---- layer 3: ConvTranspose k=4 s=2 p=1; columns ordered for direct NCHW stores
    w6_3, g3 = _subpixel_pack(p["w3"], 2, 1, g2["OH"])
    g3["start"] = g3.get("start", 0)
    w3row = _rowband_weight_np(w6_3, g3, "co_ry_tx_rx")
    b3 = np.zeros(w3row.shape[2], f32)                        # no BN / bias on last layer

    # TPU-friendly padding: K to 16 (bf16 sublane packing) or the 128-lane scratch
    # row width; N (lane) dims to 128 -> unmasked, lane-dense weight blocks.
    Kp1, Np1 = _round_up(nz, 16), _round_up(w1.shape[1], 128)
    Kp2, Np2 = _round_up(w2row.shape[1], 128), _round_up(w2row.shape[2], 128)
    Kp3, Np3 = _round_up(w3row.shape[1], 128), _round_up(w3row.shape[2], 128)

    def pad2d(w, K, N):
        o = np.zeros((K, N), f32); o[:w.shape[0], :w.shape[1]] = w; return o

    def pad3d(w, K, N):
        o = np.zeros((w.shape[0], K, N), f32); o[:, :w.shape[1], :w.shape[2]] = w; return o

    def padb(b, N):
        o = np.zeros((1, N), f32); o[0, :b.shape[0]] = b; return o

    cd = compute_dtype
    arrays = dict(
        w1=jnp.asarray(pad2d(w1, Kp1, Np1), cd), b1=jnp.asarray(padb(b1, Np1), jnp.float32),
        w2=jnp.asarray(pad3d(w2row, Kp2, Np2), cd), b2=jnp.asarray(padb(b2, Np2), jnp.float32),
        w3=jnp.asarray(pad3d(w3row, Kp3, Np3), cd), b3=jnp.asarray(padb(b3, Np3), jnp.float32),
    )
    geom = dict(nz=nz, nc=nc, k1=k1, C1=C1, C2=C2, compute_dtype=cd,
                Kp1=Kp1, Np1=Np1, Kp2=Kp2, Np2=Np2, Kp3=Kp3, Np3=Np3,
                l2=g2, l3=g3)
    return dict(arrays=arrays, geom=geom)


# Patch: _subpixel_pack omitted 'start' from geom; add it here once for clarity.
def _subpixel_pack_with_start(W_pt, stride, pad, H):  # pragma: no cover (thin wrapper)
    return _subpixel_pack(W_pt, stride, pad, H)


# ============================== fused Pallas forward =================================
def generator_forward(z, packed):
    """Inference forward of the DCGAN Generator: ONE fused Pallas kernel."""
    a, g = packed["arrays"], packed["geom"]
    cd = g["compute_dtype"]
    B = z.shape[0]
    nz, nc, k1, C1, C2 = g["nz"], g["nc"], g["k1"], g["C1"], g["C2"]
    Kp1, Np1 = g["Kp1"], g["Np1"]
    Kp2, Np2 = g["Kp2"], g["Np2"]
    Kp3, Np3 = g["Kp3"], g["Np3"]
    l2, l3 = g["l2"], g["l3"]
    m2, Q2, s2 = l2["m"], l2["Q"], l2["s"]
    pin2, start2, Hp1 = l2["pad_lo"], l2["start"], l2["Hp"]   # geometry of scr1 (g1 image)
    OW2 = l2["OH"]
    m3, Q3, s3 = l3["m"], l3["Q"], l3["s"]
    pin3, start3, Hp2 = l3["pad_lo"], l3["start"], l3["Hp"]   # geometry of scr2 (g2 image)
    OW3 = l3["OH"]

    Bp = _round_up(B, 16)            # bf16-friendly row tile for the dense layer
    Hp1r = _round_up(Hp1, 8)         # per-sample row stride in the scratch images
    Hp2r = _round_up(Hp2, 8)

    def kernel(z_ref, w1_ref, b1_ref, w2_ref, b2_ref, w3_ref, b3_ref,
               out_ref, scr1, scr2):
        # Zero the padded activation images (conv zero-padding lives in the scratch;
        # the padded K columns beyond Wp*C also stay zero and meet zero weight rows).
        scr1[...] = jnp.zeros_like(scr1)
        scr2[...] = jnp.zeros_like(scr2)

        # ---- layer 1: 1x1-input ConvTranspose == dense matmul, + BN + ReLU ----
        y1 = jnp.dot(z_ref[...], w1_ref[...], preferred_element_type=jnp.float32)
        y1 = jnp.maximum(y1 + b1_ref[...], 0.0)
        # Scatter the k1 x k1 NHWC rows into layer 2's padded input image (row layout).
        for b in range(B):
            for ky in range(k1):
                r = b * Hp1r + pin2 + ky
                scr1[r:r + 1, pin2 * C1:(pin2 + k1) * C1] = \
                    y1[b:b + 1, ky * k1 * C1:(ky + 1) * k1 * C1]

        # ---- layer 2: ConvTranspose k=6 s=4 p=1 + BN + ReLU (in-kernel im2col) ----
        # m2 accumulated row-band matmuls per sample; pixel shuffle fused into the
        # row stores that build layer 3's padded input image.
        for b in range(B):
            acc = jnp.zeros((Q2, Np2), jnp.float32)
            base = b * Hp1r + start2
            for u in range(m2):
                lhs = scr1[base + u:base + u + Q2, :].astype(cd)
                acc = acc + jnp.dot(lhs, w2_ref[u], preferred_element_type=jnp.float32)
            acc = jnp.maximum(acc + b2_ref[...], 0.0)
            for ty in range(Q2):
                for ry in range(s2):
                    r = b * Hp2r + pin3 + ty * s2 + ry
                    scr2[r:r + 1, pin3 * C2:(pin3 + OW2) * C2] = \
                        acc[ty:ty + 1, ry * OW2 * C2:(ry + 1) * OW2 * C2]

        # ---- layer 3: ConvTranspose k=4 s=2 p=1 + Tanh, NCHW stored directly ----
        for b in range(B):
            acc = jnp.zeros((Q3, Np3), jnp.float32)
            base = b * Hp2r + start3
            for u in range(m3):
                lhs = scr2[base + u:base + u + Q3, :].astype(cd)
                acc = acc + jnp.dot(lhs, w3_ref[u], preferred_element_type=jnp.float32)
            acc = jnp.tanh(acc + b3_ref[...])
            for ty in range(Q3):
                for co in range(nc):
                    out_ref[b * nc + co:b * nc + co + 1,
                            ty * s3 * OW3:(ty + 1) * s3 * OW3] = \
                        acc[ty:ty + 1, co * s3 * OW3:(co + 1) * s3 * OW3]

    # The only per-forward glue: reshape latent + a single fusable pad.
    z2 = jnp.pad(z.reshape(B, nz).astype(cd), ((0, Bp - B), (0, Kp1 - nz)))
    out2d = pl.pallas_call(
        kernel,
        out_shape=jax.ShapeDtypeStruct((B * nc, OW3 * OW3), jnp.float32),
        grid=(1,),   # whole net in one step at these sizes; see TODO at top for big shapes
        in_specs=[
            pl.BlockSpec((Bp, Kp1), lambda i: (0, 0)),
            pl.BlockSpec((Kp1, Np1), lambda i: (0, 0)),
            pl.BlockSpec((1, Np1), lambda i: (0, 0)),
            pl.BlockSpec((m2, Kp2, Np2), lambda i: (0, 0, 0)),
            pl.BlockSpec((1, Np2), lambda i: (0, 0)),
            pl.BlockSpec((m3, Kp3, Np3), lambda i: (0, 0, 0)),
            pl.BlockSpec((1, Np3), lambda i: (0, 0)),
        ],
        out_specs=pl.BlockSpec((B * nc, OW3 * OW3), lambda i: (0, 0)),
        scratch_shapes=[
            pltpu.VMEM((B * Hp1r, Kp2), jnp.float32),   # padded g1 image, row layout
            pltpu.VMEM((B * Hp2r, Kp3), jnp.float32),   # padded g2 image, row layout
        ],
        compiler_params=pltpu.CompilerParams(dimension_semantics=("arbitrary",)),
    )(z2, a["w1"], a["b1"], a["w2"], a["b2"], a["w3"], a["b3"])
    return out2d.reshape(B, nc, OW3, OW3)                     # metadata-only reshape


# ------------------------------ pure-JAX reference -----------------------------------
def _ref_convtranspose(x, W, stride, pad):
    k = W.shape[2]
    Wc = jnp.transpose(jnp.flip(W, (2, 3)), (1, 0, 2, 3))
    return jax.lax.conv_general_dilated(
        x, Wc, window_strides=(1, 1),
        padding=[(k - 1 - pad, k - 1 - pad)] * 2,
        lhs_dilation=(stride, stride),
        dimension_numbers=("NCHW", "OIHW", "NCHW"),
        precision=jax.lax.Precision.HIGHEST)


def reference_forward(z, params, normalization=True):
    def bn(x, g, b, rm, rv, eps=1e-5):
        g, b, rm, rv = (t[None, :, None, None] for t in (g, b, rm, rv))
        return (x - rm) / jnp.sqrt(rv + eps) * g + b

    g1 = _ref_convtranspose(z, params["w1"], 1, 0)
    if normalization:
        g1 = bn(g1, params["bn1_gamma"], params["bn1_beta"], params["bn1_rm"], params["bn1_rv"])
    g1 = jnp.maximum(g1, 0.0)
    g2 = _ref_convtranspose(g1, params["w2"], 4, 1)
    if normalization:
        g2 = bn(g2, params["bn2_gamma"], params["bn2_beta"], params["bn2_rm"], params["bn2_rv"])
    g2 = jnp.maximum(g2, 0.0)
    return jnp.tanh(_ref_convtranspose(g2, params["w3"], 2, 1))


# ----------------------------------- main ---------------------------------------------
if __name__ == "__main__":
    B, nz, ngf, nc, image_size = 2, 8, 8, 3, 16
    dropout_rate = 0.5          # unused: inference-mode forward, Dropout2d is identity
    normalization = True
    k1 = image_size // 8        # gen_ct1 kernel size

    key = jax.random.PRNGKey(0)
    ks = jax.random.split(key, 11)
    f32 = jnp.float32
    params = {
        # ConvTranspose2d weights, PyTorch layout (Cin, Cout, kH, kW), bias=False
        "w1": 0.15 * jax.random.normal(ks[0], (nz, 2 * ngf, k1, k1), f32),
        "w2": 0.15 * jax.random.normal(ks[1], (2 * ngf, ngf, 6, 6), f32),
        "w3": 0.15 * jax.random.normal(ks[2], (ngf, nc, 4, 4), f32),
        # BatchNorm2d params + running stats
        "bn1_gamma": 1.0 + 0.02 * jax.random.normal(ks[3], (2 * ngf,), f32),
        "bn1_beta": 0.02 * jax.random.normal(ks[4], (2 * ngf,), f32),
        "bn1_rm": 0.1 * jax.random.normal(ks[5], (2 * ngf,), f32),
        "bn1_rv": 1.0 + 0.1 * jnp.abs(jax.random.normal(ks[6], (2 * ngf,), f32)),
        "bn2_gamma": 1.0 + 0.02 * jax.random.normal(ks[7], (ngf,), f32),
        "bn2_beta": 0.02 * jax.random.normal(ks[8], (ngf,), f32),
        "bn2_rm": 0.1 * jax.random.normal(ks[9], (ngf,), f32),
        "bn2_rv": 1.0 + 0.1 * jnp.abs(jax.random.normal(ks[10], (ngf,), f32)),
    }
    z = jax.random.normal(jax.random.PRNGKey(1), (B, nz, 1, 1), f32)

    ref = reference_forward(z, params, normalization)

    # Strict semantic check with f32 MXU operands (correctness-only configuration;
    # on v5e the f32 MXU path is slow -- never benchmark this one).
    packed_f32 = pack_generator_params(params, nz=nz, ngf=ngf, nc=nc,
                                       image_size=image_size,
                                       normalization=normalization,
                                       compute_dtype=jnp.float32)
    fwd_f32 = jax.jit(lambda zz: generator_forward(zz, packed_f32))
    out_f32 = jax.block_until_ready(fwd_f32(z))
    assert out_f32.shape == (B, nc, image_size, image_size), out_f32.shape
    np.testing.assert_allclose(np.asarray(out_f32), np.asarray(ref),
                               atol=1e-3, rtol=1e-3)

    # Performance configuration: bf16 MXU operands, f32 accumulation and f32
    # inter-layer activations held in VMEM scratch.
    packed_bf16 = pack_generator_params(params, nz=nz, ngf=ngf, nc=nc,
                                        image_size=image_size,
                                        normalization=normalization,
                                        compute_dtype=jnp.bfloat16)
    fwd = jax.jit(lambda zz: generator_forward(zz, packed_bf16))
    out = jax.block_until_ready(fwd(z))
    assert out.shape == (B, nc, image_size, image_size), out.shape
    np.testing.assert_allclose(np.asarray(out), np.asarray(ref),
                               atol=3e-2, rtol=0)

    print("KERNEL_OK")
</pallas_src>

<mosaic_0001>
module attributes {stable_mosaic.version = 11 : i64} {
  func.func @kernel(%arg0: i32, %arg1: memref<16x16xf32, #tpu.memory_space<vmem>>, %arg2: memref<16x128xf32, #tpu.memory_space<vmem>>, %arg3: memref<1x128xf32, #tpu.memory_space<vmem>>, %arg4: memref<3x128x256xf32, #tpu.memory_space<vmem>>, %arg5: memref<1x256xf32, #tpu.memory_space<vmem>>, %arg6: memref<3x128x128xf32, #tpu.memory_space<vmem>>, %arg7: memref<1x128xf32, #tpu.memory_space<vmem>>, %arg8: memref<6x256xf32, #tpu.memory_space<vmem>>, %arg9: memref<16x128xf32, #tpu.memory_space<vmem>>, %arg10: memref<32x128xf32, #tpu.memory_space<vmem>>) attributes {dimension_semantics = [#tpu.dimension_semantics<arbitrary>], iteration_bounds = array<i64: 1>, scalar_prefetch = 0 : i64, scratch_operands = 2 : i64, tpu.core_type = #tpu.core_type<tc>, window_params = [{pipeline_mode = #tpu.pipeline_mode<synchronous>, transform_indices = @transform_0, window_bounds = array<i64: 16, 16>}, {pipeline_mode = #tpu.pipeline_mode<synchronous>, transform_indices = @transform_1, window_bounds = array<i64: 16, 128>}, {pipeline_mode = #tpu.pipeline_mode<synchronous>, transform_indices = @transform_2, window_bounds = array<i64: 1, 128>}, {pipeline_mode = #tpu.pipeline_mode<synchronous>, transform_indices = @transform_3, window_bounds = array<i64: 3, 128, 256>}, {pipeline_mode = #tpu.pipeline_mode<synchronous>, transform_indices = @transform_4, window_bounds = array<i64: 1, 256>}, {pipeline_mode = #tpu.pipeline_mode<synchronous>, transform_indices = @transform_5, window_bounds = array<i64: 3, 128, 128>}, {pipeline_mode = #tpu.pipeline_mode<synchronous>, transform_indices = @transform_6, window_bounds = array<i64: 1, 128>}, {pipeline_mode = #tpu.pipeline_mode<synchronous>, transform_indices = @transform_7, window_bounds = array<i64: 6, 256>}]} {
    %cst = arith.constant 0.000000e+00 : f32
    %0 = vector.broadcast %cst : f32 to vector<16x128xf32>
    %c0 = arith.constant 0 : index
    %c0_0 = arith.constant 0 : index
    %1 = vector.load %arg9[%c0, %c0_0] : memref<16x128xf32, #tpu.memory_space<vmem>>, vector<16x128xf32>
    tpu.vector_store %arg9[%c0, %c0_0], %0 {strides = array<i32>} : memref<16x128xf32, #tpu.memory_space<vmem>>, vector<16x128xf32>,
    %cst_1 = arith.constant 0.000000e+00 : f32
    %2 = vector.broadcast %cst_1 : f32 to vector<32x128xf32>
    %c0_2 = arith.constant 0 : index
    %c0_3 = arith.constant 0 : index
    %3 = vector.load %arg10[%c0_2, %c0_3] : memref<32x128xf32, #tpu.memory_space<vmem>>, vector<32x128xf32>
    tpu.vector_store %arg10[%c0_2, %c0_3], %2 {strides = array<i32>} : memref<32x128xf32, #tpu.memory_space<vmem>>, vector<32x128xf32>,
    %c0_4 = arith.constant 0 : index
    %c0_5 = arith.constant 0 : index
    %4 = vector.load %arg1[%c0_4, %c0_5] : memref<16x16xf32, #tpu.memory_space<vmem>>, vector<16x16xf32>
    %c0_6 = arith.constant 0 : index
    %c0_7 = arith.constant 0 : index
    %5 = vector.load %arg2[%c0_6, %c0_7] : memref<16x128xf32, #tpu.memory_space<vmem>>, vector<16x128xf32>
    %cst_8 = arith.constant dense<0.000000e+00> : vector<16x128xf32>
    %6 = tpu.matmul %4, %5, %cst_8 {dimension_numbers = #tpu.dot_dimension_numbers<[1], [0], [0], [1], [0, 0, 1, 1], [], []>} : vector<16x16xf32>, vector<16x128xf32>, vector<16x128xf32> -> vector<16x128xf32>
    %c0_9 = arith.constant 0 : index
    %c0_10 = arith.constant 0 : index
    %7 = vector.load %arg3[%c0_9, %c0_10] : memref<1x128xf32, #tpu.memory_space<vmem>>, vector<1x128xf32>
    %8 = vector.broadcast %7 : vector<1x128xf32> to vector<16x128xf32>
    %9 = arith.addf %6, %8 : vector<16x128xf32>
    %cst_11 = arith.constant 0.000000e+00 : f32
    %10 = vector.broadcast %cst_11 : f32 to vector<16x128xf32>
    %11 = arith.maximumf %9, %10 : vector<16x128xf32>
    %12 = vector.extract_strided_slice %11 {offsets = [0, 0], sizes = [1, 32], strides = [1, 1]} : vector<16x128xf32> to vector<1x32xf32>
    %c1 = arith.constant 1 : index
    %c16 = arith.constant 16 : index
    %13 = vector.load %arg9[%c1, %c16] : memref<16x128xf32, #tpu.memory_space<vmem>>, vector<1x32xf32>
    tpu.vector_store %arg9[%c1, %c16], %12 {strides = array<i32>} : memref<16x128xf32, #tpu.memory_space<vmem>>, vector<1x32xf32>,
    %14 = vector.extract_strided_slice %11 {offsets = [0, 32], sizes = [1, 32], strides = [1, 1]} : vector<16x128xf32> to vector<1x32xf32>
    %c2 = arith.constant 2 : index
    %c16_12 = arith.constant 16 : index
    %15 = vector.load %arg9[%c2, %c16_12] : memref<16x128xf32, #tpu.memory_space<vmem>>, vector<1x32xf32>
    tpu.vector_store %arg9[%c2, %c16_12], %14 {strides = array<i32>} : memref<16x128xf32, #tpu.memory_space<vmem>>, vector<1x32xf32>,
    %16 = vector.extract_strided_slice %11 {offsets = [1, 0], sizes = [1, 32], strides = [1, 1]} : vector<16x128xf32> to vector<1x32xf32>
    %c9 = arith.constant 9 : index
    %c16_13 = arith.constant 16 : index
    %17 = vector.load %arg9[%c9, %c16_13] : memref<16x128xf32, #tpu.memory_space<vmem>>, vector<1x32xf32>
    tpu.vector_store %arg9[%c9, %c16_13], %16 {strides = array<i32>} : memref<16x128xf32, #tpu.memory_space<vmem>>, vector<1x32xf32>,
    %18 = vector.extract_strided_slice %11 {offsets = [1, 32], sizes = [1, 32], strides = [1, 1]} : vector<16x128xf32> to vector<1x32xf32>
    %c10 = arith.constant 10 : index
    %c16_14 = arith.constant 16 : index
    %19 = vector.load %arg9[%c10, %c16_14] : memref<16x128xf32, #tpu.memory_space<vmem>>, vector<1x32xf32>
    tpu.vector_store %arg9[%c10, %c16_14], %18 {strides = array<i32>} : memref<16x128xf32, #tpu.memory_space<vmem>>, vector<1x32xf32>,
    %cst_15 = arith.constant 0.000000e+00 : f32
    %20 = vector.broadcast %cst_15 : f32 to vector<2x256xf32>
    %c0_16 = arith.constant 0 : index
    %c0_17 = arith.constant 0 : index
    %21 = vector.load %arg9[%c0_16, %c0_17] : memref<16x128xf32, #tpu.memory_space<vmem>>, vector<2x128xf32>
    %c0_18 = arith.constant 0 : index
    %c0_19 = arith.constant 0 : index
    %c0_20 = arith.constant 0 : index
    %22 = vector.load %arg4[%c0_18, %c0_19, %c0_20] : memref<3x128x256xf32, #tpu.memory_space<vmem>>, vector<1x128x256xf32>
    %23 = vector.shape_cast %22 : vector<1x128x256xf32> to vector<128x256xf32>
    %cst_21 = arith.constant dense<0.000000e+00> : vector<2x256xf32>
    %24 = tpu.matmul %21, %23, %cst_21 {dimension_numbers = #tpu.dot_dimension_numbers<[1], [0], [0], [1], [0, 0, 1, 1], [], []>} : vector<2x128xf32>, vector<128x256xf32>, vector<2x256xf32> -> vector<2x256xf32>
    %25 = arith.addf %20, %24 : vector<2x256xf32>
    %c1_22 = arith.constant 1 : index
    %c0_23 = arith.constant 0 : index
    %26 = vector.load %arg9[%c1_22, %c0_23] : memref<16x128xf32, #tpu.memory_space<vmem>>, vector<2x128xf32>
    %c1_24 = arith.constant 1 : index
    %c0_25 = arith.constant 0 : index
    %c0_26 = arith.constant 0 : index
    %27 = vector.load %arg4[%c1_24, %c0_25, %c0_26] : memref<3x128x256xf32, #tpu.memory_space<vmem>>, vector<1x128x256xf32>
    %28 = vector.shape_cast %27 : vector<1x128x256xf32> to vector<128x256xf32>
    %cst_27 = arith.constant dense<0.000000e+00> : vector<2x256xf32>
    %29 = tpu.matmul %26, %28, %cst_27 {dimension_numbers = #tpu.dot_dimension_numbers<[1], [0], [0], [1], [0, 0, 1, 1], [], []>} : vector<2x128xf32>, vector<128x256xf32>, vector<2x256xf32> -> vector<2x256xf32>
    %30 = arith.addf %25, %29 : vector<2x256xf32>
    %c2_28 = arith.constant 2 : index
    %c0_29 = arith.constant 0 : index
    %31 = vector.load %arg9[%c2_28, %c0_29] : memref<16x128xf32, #tpu.memory_space<vmem>>, vector<2x128xf32>
    %c2_30 = arith.constant 2 : index
    %c0_31 = arith.constant 0 : index
    %c0_32 = arith.constant 0 : index
    %32 = vector.load %arg4[%c2_30, %c0_31, %c0_32] : memref<3x128x256xf32, #tpu.memory_space<vmem>>, vector<1x128x256xf32>
    %33 = vector.shape_cast %32 : vector<1x128x256xf32> to vector<128x256xf32>
    %cst_33 = arith.constant dense<0.000000e+00> : vector<2x256xf32>
    %34 = tpu.matmul %31, %33, %cst_33 {dimension_numbers = #tpu.dot_dimension_numbers<[1], [0], [0], [1], [0, 0, 1, 1], [], []>} : vector<2x128xf32>, vector<128x256xf32>, vector<2x256xf32> -> vector<2x256xf32>
    %35 = arith.addf %30, %34 : vector<2x256xf32>
    %c0_34 = arith.constant 0 : index
    %c0_35 = arith.constant 0 : index
    %36 = vector.load %arg5[%c0_34, %c0_35] : memref<1x256xf32, #tpu.memory_space<vmem>>, vector<1x256xf32>
    %37 = vector.broadcast %36 : vector<1x256xf32> to vector<2x256xf32>
    %38 = arith.addf %35, %37 : vector<2x256xf32>
    %cst_36 = arith.constant 0.000000e+00 : f32
    %39 = vector.broadcast %cst_36 : f32 to vector<2x256xf32>
    %40 = arith.maximumf %38, %39 : vector<2x256xf32>
    %41 = vector.extract_strided_slice %40 {offsets = [0, 0], sizes = [1, 64], strides = [1, 1]} : vector<2x256xf32> to vector<1x64xf32>
    %c1_37 = arith.constant 1 : index
    %c8 = arith.constant 8 : index
    %42 = vector.load %arg10[%c1_37, %c8] : memref<32x128xf32, #tpu.memory_space<vmem>>, vector<1x64xf32>
    tpu.vector_store %arg10[%c1_37, %c8], %41 {strides = array<i32>} : memref<32x128xf32, #tpu.memory_space<vmem>>, vector<1x64xf32>,
    %43 = vector.extract_strided_slice %40 {offsets = [0, 64], sizes = [1, 64], strides = [1, 1]} : vector<2x256xf32> to vector<1x64xf32>
    %c2_38 = arith.constant 2 : index
    %c8_39 = arith.constant 8 : index
    %44 = vector.load %arg10[%c2_38, %c8_39] : memref<32x128xf32, #tpu.memory_space<vmem>>, vector<1x64xf32>
    tpu.vector_store %arg10[%c2_38, %c8_39], %43 {strides = array<i32>} : memref<32x128xf32, #tpu.memory_space<vmem>>, vector<1x64xf32>,
    %45 = vector.extract_strided_slice %40 {offsets = [0, 128], sizes = [1, 64], strides = [1, 1]} : vector<2x256xf32> to vector<1x64xf32>
    %c3 = arith.constant 3 : index
    %c8_40 = arith.constant 8 : index
    %46 = vector.load %arg10[%c3, %c8_40] : memref<32x128xf32, #tpu.memory_space<vmem>>, vector<1x64xf32>
    tpu.vector_store %arg10[%c3, %c8_40], %45 {strides = array<i32>} : memref<32x128xf32, #tpu.memory_space<vmem>>, vector<1x64xf32>,
    %47 = vector.extract_strided_slice %40 {offsets = [0, 192], sizes = [1, 64], strides = [1, 1]} : vector<2x256xf32> to vector<1x64xf32>
    %c4 = arith.constant 4 : index
    %c8_41 = arith.constant 8 : index
    %48 = vector.load %arg10[%c4, %c8_41] : memref<32x128xf32, #tpu.memory_space<vmem>>, vector<1x64xf32>
    tpu.vector_store %arg10[%c4, %c8_41], %47 {strides = array<i32>} : memref<32x128xf32, #tpu.memory_space<vmem>>, vector<1x64xf32>,
    %49 = vector.extract_strided_slice %40 {offsets = [1, 0], sizes = [1, 64], strides = [1, 1]} : vector<2x256xf32> to vector<1x64xf32>
    %c5 = arith.constant 5 : index
    %c8_42 = arith.constant 8 : index
    %50 = vector.load %arg10[%c5, %c8_42] : memref<32x128xf32, #tpu.memory_space<vmem>>, vector<1x64xf32>
    tpu.vector_store %arg10[%c5, %c8_42], %49 {strides = array<i32>} : memref<32x128xf32, #tpu.memory_space<vmem>>, vector<1x64xf32>,
    %51 = vector.extract_strided_slice %40 {offsets = [1, 64], sizes = [1, 64], strides = [1, 1]} : vector<2x256xf32> to vector<1x64xf32>
    %c6 = arith.constant 6 : index
    %c8_43 = arith.constant 8 : index
    %52 = vector.load %arg10[%c6, %c8_43] : memref<32x128xf32, #tpu.memory_space<vmem>>, vector<1x64xf32>
    tpu.vector_store %arg10[%c6, %c8_43], %51 {strides = array<i32>} : memref<32x128xf32, #tpu.memory_space<vmem>>, vector<1x64xf32>,
    %53 = vector.extract_strided_slice %40 {offsets = [1, 128], sizes = [1, 64], strides = [1, 1]} : vector<2x256xf32> to vector<1x64xf32>
    %c7 = arith.constant 7 : index
    %c8_44 = arith.constant 8 : index
    %54 = vector.load %arg10[%c7, %c8_44] : memref<32x128xf32, #tpu.memory_space<vmem>>, vector<1x64xf32>
    tpu.vector_store %arg10[%c7, %c8_44], %53 {strides = array<i32>} : memref<32x128xf32, #tpu.memory_space<vmem>>, vector<1x64xf32>,
    %55 = vector.extract_strided_slice %40 {offsets = [1, 192], sizes = [1, 64], strides = [1, 1]} : vector<2x256xf32> to vector<1x64xf32>
    %c8_45 = arith.constant 8 : index
    %c8_46 = arith.constant 8 : index
    %56 = vector.load %arg10[%c8_45, %c8_46] : memref<32x128xf32, #tpu.memory_space<vmem>>, vector<1x64xf32>
    tpu.vector_store %arg10[%c8_45, %c8_46], %55 {strides = array<i32>} : memref<32x128xf32, #tpu.memory_space<vmem>>, vector<1x64xf32>,
    %cst_47 = arith.constant 0.000000e+00 : f32
    %57 = vector.broadcast %cst_47 : f32 to vector<2x256xf32>
    %c8_48 = arith.constant 8 : index
    %c0_49 = arith.constant 0 : index
    %58 = vector.load %arg9[%c8_48, %c0_49] : memref<16x128xf32, #tpu.memory_space<vmem>>, vector<2x128xf32>
    %c0_50 = arith.constant 0 : index
    %c0_51 = arith.constant 0 : index
    %c0_52 = arith.constant 0 : index
    %59 = vector.load %arg4[%c0_50, %c0_51, %c0_52] : memref<3x128x256xf32, #tpu.memory_space<vmem>>, vector<1x128x256xf32>
    %60 = vector.shape_cast %59 : vector<1x128x256xf32> to vector<128x256xf32>
    %cst_53 = arith.constant dense<0.000000e+00> : vector<2x256xf32>
    %61 = tpu.matmul %58, %60, %cst_53 {dimension_numbers = #tpu.dot_dimension_numbers<[1], [0], [0], [1], [0, 0, 1, 1], [], []>} : vector<2x128xf32>, vector<128x256xf32>, vector<2x256xf32> -> vector<2x256xf32>
    %62 = arith.addf %57, %61 : vector<2x256xf32>
    %c9_54 = arith.constant 9 : index
    %c0_55 = arith.constant 0 : index
    %63 = vector.load %arg9[%c9_54, %c0_55] : memref<16x128xf32, #tpu.memory_space<vmem>>, vector<2x128xf32>
    %c1_56 = arith.constant 1 : index
    %c0_57 = arith.constant 0 : index
    %c0_58 = arith.constant 0 : index
    %64 = vector.load %arg4[%c1_56, %c0_57, %c0_58] : memref<3x128x256xf32, #tpu.memory_space<vmem>>, vector<1x128x256xf32>
    %65 = vector.shape_cast %64 : vector<1x128x256xf32> to vector<128x256xf32>
    %cst_59 = arith.constant dense<0.000000e+00> : vector<2x256xf32>
    %66 = tpu.matmul %63, %65, %cst_59 {dimension_numbers = #tpu.dot_dimension_numbers<[1], [0], [0], [1], [0, 0, 1, 1], [], []>} : vector<2x128xf32>, vector<128x256xf32>, vector<2x256xf32> -> vector<2x256xf32>
    %67 = arith.addf %62, %66 : vector<2x256xf32>
    %c10_60 = arith.constant 10 : index
    %c0_61 = arith.constant 0 : index
    %68 = vector.load %arg9[%c10_60, %c0_61] : memref<16x128xf32, #tpu.memory_space<vmem>>, vector<2x128xf32>
    %c2_62 = arith.constant 2 : index
    %c0_63 = arith.constant 0 : index
    %c0_64 = arith.constant 0 : index
    %69 = vector.load %arg4[%c2_62, %c0_63, %c0_64] : memref<3x128x256xf32, #tpu.memory_space<vmem>>, vector<1x128x256xf32>
    %70 = vector.shape_cast %69 : vector<1x128x256xf32> to vector<128x256xf32>
    %cst_65 = arith.constant dense<0.000000e+00> : vector<2x256xf32>
    %71 = tpu.matmul %68, %70, %cst_65 {dimension_numbers = #tpu.dot_dimension_numbers<[1], [0], [0], [1], [0, 0, 1, 1], [], []>} : vector<2x128xf32>, vector<128x256xf32>, vector<2x256xf32> -> vector<2x256xf32>
    %72 = arith.addf %67, %71 : vector<2x256xf32>
    %c0_66 = arith.constant 0 : index
    %c0_67 = arith.constant 0 : index
    %73 = vector.load %arg5[%c0_66, %c0_67] : memref<1x256xf32, #tpu.memory_space<vmem>>, vector<1x256xf32>
    %74 = vector.broadcast %73 : vector<1x256xf32> to vector<2x256xf32>
    %75 = arith.addf %72, %74 : vector<2x256xf32>
    %cst_68 = arith.constant 0.000000e+00 : f32
    %76 = vector.broadcast %cst_68 : f32 to vector<2x256xf32>
    %77 = arith.maximumf %75, %76 : vector<2x256xf32>
    %78 = vector.extract_strided_slice %77 {offsets = [0, 0], sizes = [1, 64], strides = [1, 1]} : vector<2x256xf32> to vector<1x64xf32>
    %c17 = arith.constant 17 : index
    %c8_69 = arith.constant 8 : index
    %79 = vector.load %arg10[%c17, %c8_69] : memref<32x128xf32, #tpu.memory_space<vmem>>, vector<1x64xf32>
    tpu.vector_store %arg10[%c17, %c8_69], %78 {strides = array<i32>} : memref<32x128xf32, #tpu.memory_space<vmem>>, vector<1x64xf32>,
    %80 = vector.extract_strided_slice %77 {offsets = [0, 64], sizes = [1, 64], strides = [1, 1]} : vector<2x256xf32> to vector<1x64xf32>
    %c18 = arith.constant 18 : index
    %c8_70 = arith.constant 8 : index
    %81 = vector.load %arg10[%c18, %c8_70] : memref<32x128xf32, #tpu.memory_space<vmem>>, vector<1x64xf32>
    tpu.vector_store %arg10[%c18, %c8_70], %80 {strides = array<i32>} : memref<32x128xf32, #tpu.memory_space<vmem>>, vector<1x64xf32>,
    %82 = vector.extract_strided_slice %77 {offsets = [0, 128], sizes = [1, 64], strides = [1, 1]} : vector<2x256xf32> to vector<1x64xf32>
    %c19 = arith.constant 19 : index
    %c8_71 = arith.constant 8 : index
    %83 = vector.load %arg10[%c19, %c8_71] : memref<32x128xf32, #tpu.memory_space<vmem>>, vector<1x64xf32>
    tpu.vector_store %arg10[%c19, %c8_71], %82 {strides = array<i32>} : memref<32x128xf32, #tpu.memory_space<vmem>>, vector<1x64xf32>,
    %84 = vector.extract_strided_slice %77 {offsets = [0, 192], sizes = [1, 64], strides = [1, 1]} : vector<2x256xf32> to vector<1x64xf32>
    %c20 = arith.constant 20 : index
    %c8_72 = arith.constant 8 : index
    %85 = vector.load %arg10[%c20, %c8_72] : memref<32x128xf32, #tpu.memory_space<vmem>>, vector<1x64xf32>
    tpu.vector_store %arg10[%c20, %c8_72], %84 {strides = array<i32>} : memref<32x128xf32, #tpu.memory_space<vmem>>, vector<1x64xf32>,
    %86 = vector.extract_strided_slice %77 {offsets = [1, 0], sizes = [1, 64], strides = [1, 1]} : vector<2x256xf32> to vector<1x64xf32>
    %c21 = arith.constant 21 : index
    %c8_73 = arith.constant 8 : index
    %87 = vector.load %arg10[%c21, %c8_73] : memref<32x128xf32, #tpu.memory_space<vmem>>, vector<1x64xf32>
    tpu.vector_store %arg10[%c21, %c8_73], %86 {strides = array<i32>} : memref<32x128xf32, #tpu.memory_space<vmem>>, vector<1x64xf32>,
    %88 = vector.extract_strided_slice %77 {offsets = [1, 64], sizes = [1, 64], strides = [1, 1]} : vector<2x256xf32> to vector<1x64xf32>
    %c22 = arith.constant 22 : index
    %c8_74 = arith.constant 8 : index
    %89 = vector.load %arg10[%c22, %c8_74] : memref<32x128xf32, #tpu.memory_space<vmem>>, vector<1x64xf32>
    tpu.vector_store %arg10[%c22, %c8_74], %88 {strides = array<i32>} : memref<32x128xf32, #tpu.memory_space<vmem>>, vector<1x64xf32>,
    %90 = vector.extract_strided_slice %77 {offsets = [1, 128], sizes = [1, 64], strides = [1, 1]} : vector<2x256xf32> to vector<1x64xf32>
    %c23 = arith.constant 23 : index
    %c8_75 = arith.constant 8 : index
    %91 = vector.load %arg10[%c23, %c8_75] : memref<32x128xf32, #tpu.memory_space<vmem>>, vector<1x64xf32>
    tpu.vector_store %arg10[%c23, %c8_75], %90 {strides = array<i32>} : memref<32x128xf32, #tpu.memory_space<vmem>>, vector<1x64xf32>,
    %92 = vector.extract_strided_slice %77 {offsets = [1, 192], sizes = [1, 64], strides = [1, 1]} : vector<2x256xf32> to vector<1x64xf32>
    %c24 = arith.constant 24 : index
    %c8_76 = arith.constant 8 : index
    %93 = vector.load %arg10[%c24, %c8_76] : memref<32x128xf32, #tpu.memory_space<vmem>>, vector<1x64xf32>
    tpu.vector_store %arg10[%c24, %c8_76], %92 {strides = array<i32>} : memref<32x128xf32, #tpu.memory_space<vmem>>, vector<1x64xf32>,
    %cst_77 = arith.constant 0.000000e+00 : f32
    %94 = vector.broadcast %cst_77 : f32 to vector<8x128xf32>
    %c0_78 = arith.constant 0 : index
    %c0_79 = arith.constant 0 : index
    %95 = vector.load %arg10[%c0_78, %c0_79] : memref<32x128xf32, #tpu.memory_space<vmem>>, vector<8x128xf32>
    %c0_80 = arith.constant 0 : index
    %c0_81 = arith.constant 0 : index
    %c0_82 = arith.constant 0 : index
    %96 = vector.load %arg6[%c0_80, %c0_81, %c0_82] : memref<3x128x128xf32, #tpu.memory_space<vmem>>, vector<1x128x128xf32>
    %97 = vector.shape_cast %96 : vector<1x128x128xf32> to vector<128x128xf32>
    %cst_83 = arith.constant dense<0.000000e+00> : vector<8x128xf32>
    %98 = tpu.matmul %95, %97, %cst_83 {dimension_numbers = #tpu.dot_dimension_numbers<[1], [0], [0], [1], [0, 0, 1, 1], [], []>} : vector<8x128xf32>, vector<128x128xf32>, vector<8x128xf32> -> vector<8x128xf32>
    %99 = arith.addf %94, %98 : vector<8x128xf32>
    %c1_84 = arith.constant 1 : index
    %c0_85 = arith.constant 0 : index
    %100 = vector.load %arg10[%c1_84, %c0_85] : memref<32x128xf32, #tpu.memory_space<vmem>>, vector<8x128xf32>
    %c1_86 = arith.constant 1 : index
    %c0_87 = arith.constant 0 : index
    %c0_88 = arith.constant 0 : index
    %101 = vector.load %arg6[%c1_86, %c0_87, %c0_88] : memref<3x128x128xf32, #tpu.memory_space<vmem>>, vector<1x128x128xf32>
    %102 = vector.shape_cast %101 : vector<1x128x128xf32> to vector<128x128xf32>
    %cst_89 = arith.constant dense<0.000000e+00> : vector<8x128xf32>
    %103 = tpu.matmul %100, %102, %cst_89 {dimension_numbers = #tpu.dot_dimension_numbers<[1], [0], [0], [1], [0, 0, 1, 1], [], []>} : vector<8x128xf32>, vector<128x128xf32>, vector<8x128xf32> -> vector<8x128xf32>
    %104 = arith.addf %99, %103 : vector<8x128xf32>
    %c2_90 = arith.constant 2 : index
    %c0_91 = arith.constant 0 : index
    %105 = vector.load %arg10[%c2_90, %c0_91] : memref<32x128xf32, #tpu.memory_space<vmem>>, vector<8x128xf32>
    %c2_92 = arith.constant 2 : index
    %c0_93 = arith.constant 0 : index
    %c0_94 = arith.constant 0 : index
    %106 = vector.load %arg6[%c2_92, %c0_93, %c0_94] : memref<3x128x128xf32, #tpu.memory_space<vmem>>, vector<1x128x128xf32>
    %107 = vector.shape_cast %106 : vector<1x128x128xf32> to vector<128x128xf32>
    %cst_95 = arith.constant dense<0.000000e+00> : vector<8x128xf32>
    %108 = tpu.matmul %105, %107, %cst_95 {dimension_numbers = #tpu.dot_dimension_numbers<[1], [0], [0], [1], [0, 0, 1, 1], [], []>} : vector<8x128xf32>, vector<128x128xf32>, vector<8x128xf32> -> vector<8x128xf32>
    %109 = arith.addf %104, %108 : vector<8x128xf32>
    %c0_96 = arith.constant 0 : index
    %c0_97 = arith.constant 0 : index
    %110 = vector.load %arg7[%c0_96, %c0_97] : memref<1x128xf32, #tpu.memory_space<vmem>>, vector<1x128xf32>
    %111 = vector.broadcast %110 : vector<1x128xf32> to vector<8x128xf32>
    %112 = arith.addf %109, %111 : vector<8x128xf32>
    %113 = math.tanh %112 : vector<8x128xf32>
    %114 = vector.extract_strided_slice %113 {offsets = [0, 0], sizes = [1, 32], strides = [1, 1]} : vector<8x128xf32> to vector<1x32xf32>
    %c0_98 = arith.constant 0 : index
    %c0_99 = arith.constant 0 : index
    %115 = vector.load %arg8[%c0_98, %c0_99] : memref<6x256xf32, #tpu.memory_space<vmem>>, vector<1x32xf32>
    tpu.vector_store %arg8[%c0_98, %c0_99], %114 {strides = array<i32>} : memref<6x256xf32, #tpu.memory_space<vmem>>, vector<1x32xf32>,
    %116 = vector.extract_strided_slice %113 {offsets = [0, 32], sizes = [1, 32], strides = [1, 1]} : vector<8x128xf32> to vector<1x32xf32>
    %c1_100 = arith.constant 1 : index
    %c0_101 = arith.constant 0 : index
    %117 = vector.load %arg8[%c1_100, %c0_101] : memref<6x256xf32, #tpu.memory_space<vmem>>, vector<1x32xf32>
    tpu.vector_store %arg8[%c1_100, %c0_101], %116 {strides = array<i32>} : memref<6x256xf32, #tpu.memory_space<vmem>>, vector<1x32xf32>,
    %118 = vector.extract_strided_slice %113 {offsets = [0, 64], sizes = [1, 32], strides = [1, 1]} : vector<8x128xf32> to vector<1x32xf32>
    %c2_102 = arith.constant 2 : index
    %c0_103 = arith.constant 0 : index
    %119 = vector.load %arg8[%c2_102, %c0_103] : memref<6x256xf32, #tpu.memory_space<vmem>>, vector<1x32xf32>
    tpu.vector_store %arg8[%c2_102, %c0_103], %118 {strides = array<i32>} : memref<6x256xf32, #tpu.memory_space<vmem>>, vector<1x32xf32>,
    %120 = vector.extract_strided_slice %113 {offsets = [1, 0], sizes = [1, 32], strides = [1, 1]} : vector<8x128xf32> to vector<1x32xf32>
    %c0_104 = arith.constant 0 : index
    %c32 = arith.constant 32 : index
    %121 = vector.load %arg8[%c0_104, %c32] : memref<6x256xf32, #tpu.memory_space<vmem>>, vector<1x32xf32>
    tpu.vector_store %arg8[%c0_104, %c32], %120 {strides = array<i32>} : memref<6x256xf32, #tpu.memory_space<vmem>>, vector<1x32xf32>,
    %122 = vector.extract_strided_slice %113 {offsets = [1, 32], sizes = [1, 32], strides = [1, 1]} : vector<8x128xf32> to vector<1x32xf32>
    %c1_105 = arith.constant 1 : index
    %c32_106 = arith.constant 32 : index
    %123 = vector.load %arg8[%c1_105, %c32_106] : memref<6x256xf32, #tpu.memory_space<vmem>>, vector<1x32xf32>
    tpu.vector_store %arg8[%c1_105, %c32_106], %122 {strides = array<i32>} : memref<6x256xf32, #tpu.memory_space<vmem>>, vector<1x32xf32>,
    %124 = vector.extract_strided_slice %113 {offsets = [1, 64], sizes = [1, 32], strides = [1, 1]} : vector<8x128xf32> to vector<1x32xf32>
    %c2_107 = arith.constant 2 : index
    %c32_108 = arith.constant 32 : index
    %125 = vector.load %arg8[%c2_107, %c32_108] : memref<6x256xf32, #tpu.memory_space<vmem>>, vector<1x32xf32>
    tpu.vector_store %arg8[%c2_107, %c32_108], %124 {strides = array<i32>} : memref<6x256xf32, #tpu.memory_space<vmem>>, vector<1x32xf32>,
    %126 = vector.extract_strided_slice %113 {offsets = [2, 0], sizes = [1, 32], strides = [1, 1]} : vector<8x128xf32> to vector<1x32xf32>
    %c0_109 = arith.constant 0 : index
    %c64 = arith.constant 64 : index
    %127 = vector.load %arg8[%c0_109, %c64] : memref<6x256xf32, #tpu.memory_space<vmem>>, vector<1x32xf32>
    tpu.vector_store %arg8[%c0_109, %c64], %126 {strides = array<i32>} : memref<6x256xf32, #tpu.memory_space<vmem>>, vector<1x32xf32>,
    %128 = vector.extract_strided_slice %113 {offsets = [2, 32], sizes = [1, 32], strides = [1, 1]} : vector<8x128xf32> to vector<1x32xf32>
    %c1_110 = arith.constant 1 : index
    %c64_111 = arith.constant 64 : index
    %129 = vector.load %arg8[%c1_110, %c64_111] : memref<6x256xf32, #tpu.memory_space<vmem>>, vector<1x32xf32>
    tpu.vector_store %arg8[%c1_110, %c64_111], %128 {strides = array<i32>} : memref<6x256xf32, #tpu.memory_space<vmem>>, vector<1x32xf32>,
    %130 = vector.extract_strided_slice %113 {offsets = [2, 64], sizes = [1, 32], strides = [1, 1]} : vector<8x128xf32> to vector<1x32xf32>
    %c2_112 = arith.constant 2 : index
    %c64_113 = arith.constant 64 : index
    %131 = vector.load %arg8[%c2_112, %c64_113] : memref<6x256xf32, #tpu.memory_space<vmem>>, vector<1x32xf32>
    tpu.vector_store %arg8[%c2_112, %c64_113], %130 {strides = array<i32>} : memref<6x256xf32, #tpu.memory_space<vmem>>, vector<1x32xf32>,
    %132 = vector.extract_strided_slice %113 {offsets = [3, 0], sizes = [1, 32], strides = [1, 1]} : vector<8x128xf32> to vector<1x32xf32>
    %c0_114 = arith.constant 0 : index
    %c96 = arith.constant 96 : index
    %133 = vector.load %arg8[%c0_114, %c96] : memref<6x256xf32, #tpu.memory_space<vmem>>, vector<1x32xf32>
    tpu.vector_store %arg8[%c0_114, %c96], %132 {strides = array<i32>} : memref<6x256xf32, #tpu.memory_space<vmem>>, vector<1x32xf32>,
    %134 = vector.extract_strided_slice %113 {offsets = [3, 32], sizes = [1, 32], strides = [1, 1]} : vector<8x128xf32> to vector<1x32xf32>
    %c1_115 = arith.constant 1 : index
    %c96_116 = arith.constant 96 : index
    %135 = vector.load %arg8[%c1_115, %c96_116] : memref<6x256xf32, #tpu.memory_space<vmem>>, vector<1x32xf32>
    tpu.vector_store %arg8[%c1_115, %c96_116], %134 {strides = array<i32>} : memref<6x256xf32, #tpu.memory_space<vmem>>, vector<1x32xf32>,
    %136 = vector.extract_strided_slice %113 {offsets = [3, 64], sizes = [1, 32], strides = [1, 1]} : vector<8x128xf32> to vector<1x32xf32>
    %c2_117 = arith.constant 2 : index
    %c96_118 = arith.constant 96 : index
    %137 = vector.load %arg8[%c2_117, %c96_118] : memref<6x256xf32, #tpu.memory_space<vmem>>, vector<1x32xf32>
    tpu.vector_store %arg8[%c2_117, %c96_118], %136 {strides = array<i32>} : memref<6x256xf32, #tpu.memory_space<vmem>>, vector<1x32xf32>,
    %138 = vector.extract_strided_slice %113 {offsets = [4, 0], sizes = [1, 32], strides = [1, 1]} : vector<8x128xf32> to vector<1x32xf32>
    %c0_119 = arith.constant 0 : index
    %c128 = arith.constant 128 : index
    %139 = vector.load %arg8[%c0_119, %c128] : memref<6x256xf32, #tpu.memory_space<vmem>>, vector<1x32xf32>
    tpu.vector_store %arg8[%c0_119, %c128], %138 {strides = array<i32>} : memref<6x256xf32, #tpu.memory_space<vmem>>, vector<1x32xf32>,
    %140 = vector.extract_strided_slice %113 {offsets = [4, 32], sizes = [1, 32], strides = [1, 1]} : vector<8x128xf32> to vector<1x32xf32>
    %c1_120 = arith.constant 1 : index
    %c128_121 = arith.constant 128 : index
    %141 = vector.load %arg8[%c1_120, %c128_121] : memref<6x256xf32, #tpu.memory_space<vmem>>, vector<1x32xf32>
    tpu.vector_store %arg8[%c1_120, %c128_121], %140 {strides = array<i32>} : memref<6x256xf32, #tpu.memory_space<vmem>>, vector<1x32xf32>,
    %142 = vector.extract_strided_slice %113 {offsets = [4, 64], sizes = [1, 32], strides = [1, 1]} : vector<8x128xf32> to vector<1x32xf32>
    %c2_122 = arith.constant 2 : index
    %c128_123 = arith.constant 128 : index
    %143 = vector.load %arg8[%c2_122, %c128_123] : memref<6x256xf32, #tpu.memory_space<vmem>>, vector<1x32xf32>
    tpu.vector_store %arg8[%c2_122, %c128_123], %142 {strides = array<i32>} : memref<6x256xf32, #tpu.memory_space<vmem>>, vector<1x32xf32>,
    %144 = vector.extract_strided_slice %113 {offsets = [5, 0], sizes = [1, 32], strides = [1, 1]} : vector<8x128xf32> to vector<1x32xf32>
    %c0_124 = arith.constant 0 : index
    %c160 = arith.constant 160 : index
    %145 = vector.load %arg8[%c0_124, %c160] : memref<6x256xf32, #tpu.memory_space<vmem>>, vector<1x32xf32>
    tpu.vector_store %arg8[%c0_124, %c160], %144 {strides = array<i32>} : memref<6x256xf32, #tpu.memory_space<vmem>>, vector<1x32xf32>,
    %146 = vector.extract_strided_slice %113 {offsets = [5, 32], sizes = [1, 32], strides = [1, 1]} : vector<8x128xf32> to vector<1x32xf32>
    %c1_125 = arith.constant 1 : index
    %c160_126 = arith.constant 160 : index
    %147 = vector.load %arg8[%c1_125, %c160_126] : memref<6x256xf32, #tpu.memory_space<vmem>>, vector<1x32xf32>
    tpu.vector_store %arg8[%c1_125, %c160_126], %146 {strides = array<i32>} : memref<6x256xf32, #tpu.memory_space<vmem>>, vector<1x32xf32>,
    %148 = vector.extract_strided_slice %113 {offsets = [5, 64], sizes = [1, 32], strides = [1, 1]} : vector<8x128xf32> to vector<1x32xf32>
    %c2_127 = arith.constant 2 : index
    %c160_128 = arith.constant 160 : index
    %149 = vector.load %arg8[%c2_127, %c160_128] : memref<6x256xf32, #tpu.memory_space<vmem>>, vector<1x32xf32>
    tpu.vector_store %arg8[%c2_127, %c160_128], %148 {strides = array<i32>} : memref<6x256xf32, #tpu.memory_space<vmem>>, vector<1x32xf32>,
    %150 = vector.extract_strided_slice %113 {offsets = [6, 0], sizes = [1, 32], strides = [1, 1]} : vector<8x128xf32> to vector<1x32xf32>
    %c0_129 = arith.constant 0 : index
    %c192 = arith.constant 192 : index
    %151 = vector.load %arg8[%c0_129, %c192] : memref<6x256xf32, #tpu.memory_space<vmem>>, vector<1x32xf32>
    tpu.vector_store %arg8[%c0_129, %c192], %150 {strides = array<i32>} : memref<6x256xf32, #tpu.memory_space<vmem>>, vector<1x32xf32>,
    %152 = vector.extract_strided_slice %113 {offsets = [6, 32], sizes = [1, 32], strides = [1, 1]} : vector<8x128xf32> to vector<1x32xf32>
    %c1_130 = arith.constant 1 : index
    %c192_131 = arith.constant 192 : index
    %153 = vector.load %arg8[%c1_130, %c192_131] : memref<6x256xf32, #tpu.memory_space<vmem>>, vector<1x32xf32>
    tpu.vector_store %arg8[%c1_130, %c192_131], %152 {strides = array<i32>} : memref<6x256xf32, #tpu.memory_space<vmem>>, vector<1x32xf32>,
    %154 = vector.extract_strided_slice %113 {offsets = [6, 64], sizes = [1, 32], strides = [1, 1]} : vector<8x128xf32> to vector<1x32xf32>
    %c2_132 = arith.constant 2 : index
    %c192_133 = arith.constant 192 : index
    %155 = vector.load %arg8[%c2_132, %c192_133] : memref<6x256xf32, #tpu.memory_space<vmem>>, vector<1x32xf32>
    tpu.vector_store %arg8[%c2_132, %c192_133], %154 {strides = array<i32>} : memref<6x256xf32, #tpu.memory_space<vmem>>, vector<1x32xf32>,
    %156 = vector.extract_strided_slice %113 {offsets = [7, 0], sizes = [1, 32], strides = [1, 1]} : vector<8x128xf32> to vector<1x32xf32>
    %c0_134 = arith.constant 0 : index
    %c224 = arith.constant 224 : index
    %157 = vector.load %arg8[%c0_134, %c224] : memref<6x256xf32, #tpu.memory_space<vmem>>, vector<1x32xf32>
    tpu.vector_store %arg8[%c0_134, %c224], %156 {strides = array<i32>} : memref<6x256xf32, #tpu.memory_space<vmem>>, vector<1x32xf32>,
    %158 = vector.extract_strided_slice %113 {offsets = [7, 32], sizes = [1, 32], strides = [1, 1]} : vector<8x128xf32> to vector<1x32xf32>
    %c1_135 = arith.constant 1 : index
    %c224_136 = arith.constant 224 : index
    %159 = vector.load %arg8[%c1_135, %c224_136] : memref<6x256xf32, #tpu.memory_space<vmem>>, vector<1x32xf32>
    tpu.vector_store %arg8[%c1_135, %c224_136], %158 {strides = array<i32>} : memref<6x256xf32, #tpu.memory_space<vmem>>, vector<1x32xf32>,
    %160 = vector.extract_strided_slice %113 {offsets = [7, 64], sizes = [1, 32], strides = [1, 1]} : vector<8x128xf32> to vector<1x32xf32>
    %c2_137 = arith.constant 2 : index
    %c224_138 = arith.constant 224 : index
    %161 = vector.load %arg8[%c2_137, %c224_138] : memref<6x256xf32, #tpu.memory_space<vmem>>, vector<1x32xf32>
    tpu.vector_store %arg8[%c2_137, %c224_138], %160 {strides = array<i32>} : memref<6x256xf32, #tpu.memory_space<vmem>>, vector<1x32xf32>,
    %cst_139 = arith.constant 0.000000e+00 : f32
    %162 = vector.broadcast %cst_139 : f32 to vector<8x128xf32>
    %c16_140 = arith.constant 16 : index
    %c0_141 = arith.constant 0 : index
    %163 = vector.load %arg10[%c16_140, %c0_141] : memref<32x128xf32, #tpu.memory_space<vmem>>, vector<8x128xf32>
    %c0_142 = arith.constant 0 : index
    %c0_143 = arith.constant 0 : index
    %c0_144 = arith.constant 0 : index
    %164 = vector.load %arg6[%c0_142, %c0_143, %c0_144] : memref<3x128x128xf32, #tpu.memory_space<vmem>>, vector<1x128x128xf32>
    %165 = vector.shape_cast %164 : vector<1x128x128xf32> to vector<128x128xf32>
    %cst_145 = arith.constant dense<0.000000e+00> : vector<8x128xf32>
    %166 = tpu.matmul %163, %165, %cst_145 {dimension_numbers = #tpu.dot_dimension_numbers<[1], [0], [0], [1], [0, 0, 1, 1], [], []>} : vector<8x128xf32>, vector<128x128xf32>, vector<8x128xf32> -> vector<8x128xf32>
    %167 = arith.addf %162, %166 : vector<8x128xf32>
    %c17_146 = arith.constant 17 : index
    %c0_147 = arith.constant 0 : index
    %168 = vector.load %arg10[%c17_146, %c0_147] : memref<32x128xf32, #tpu.memory_space<vmem>>, vector<8x128xf32>
    %c1_148 = arith.constant 1 : index
    %c0_149 = arith.constant 0 : index
    %c0_150 = arith.constant 0 : index
    %169 = vector.load %arg6[%c1_148, %c0_149, %c0_150] : memref<3x128x128xf32, #tpu.memory_space<vmem>>, vector<1x128x128xf32>
    %170 = vector.shape_cast %169 : vector<1x128x128xf32> to vector<128x128xf32>
    %cst_151 = arith.constant dense<0.000000e+00> : vector<8x128xf32>
    %171 = tpu.matmul %168, %170, %cst_151 {dimension_numbers = #tpu.dot_dimension_numbers<[1], [0], [0], [1], [0, 0, 1, 1], [], []>} : vector<8x128xf32>, vector<128x128xf32>, vector<8x128xf32> -> vector<8x128xf32>
    %172 = arith.addf %167, %171 : vector<8x128xf32>
    %c18_152 = arith.constant 18 : index
    %c0_153 = arith.constant 0 : index
    %173 = vector.load %arg10[%c18_152, %c0_153] : memref<32x128xf32, #tpu.memory_space<vmem>>, vector<8x128xf32>
    %c2_154 = arith.constant 2 : index
    %c0_155 = arith.constant 0 : index
    %c0_156 = arith.constant 0 : index
    %174 = vector.load %arg6[%c2_154, %c0_155, %c0_156] : memref<3x128x128xf32, #tpu.memory_space<vmem>>, vector<1x128x128xf32>
    %175 = vector.shape_cast %174 : vector<1x128x128xf32> to vector<128x128xf32>
    %cst_157 = arith.constant dense<0.000000e+00> : vector<8x128xf32>
    %176 = tpu.matmul %173, %175, %cst_157 {dimension_numbers = #tpu.dot_dimension_numbers<[1], [0], [0], [1], [0, 0, 1, 1], [], []>} : vector<8x128xf32>, vector<128x128xf32>, vector<8x128xf32> -> vector<8x128xf32>
    %177 = arith.addf %172, %176 : vector<8x128xf32>
    %c0_158 = arith.constant 0 : index
    %c0_159 = arith.constant 0 : index
    %178 = vector.load %arg7[%c0_158, %c0_159] : memref<1x128xf32, #tpu.memory_space<vmem>>, vector<1x128xf32>
    %179 = vector.broadcast %178 : vector<1x128xf32> to vector<8x128xf32>
    %180 = arith.addf %177, %179 : vector<8x128xf32>
    %181 = math.tanh %180 : vector<8x128xf32>
    %182 = vector.extract_strided_slice %181 {offsets = [0, 0], sizes = [1, 32], strides = [1, 1]} : vector<8x128xf32> to vector<1x32xf32>
    %c3_160 = arith.constant 3 : index
    %c0_161 = arith.constant 0 : index
    %183 = vector.load %arg8[%c3_160, %c0_161] : memref<6x256xf32, #tpu.memory_space<vmem>>, vector<1x32xf32>
    tpu.vector_store %arg8[%c3_160, %c0_161], %182 {strides = array<i32>} : memref<6x256xf32, #tpu.memory_space<vmem>>, vector<1x32xf32>,
    %184 = vector.extract_strided_slice %181 {offsets = [0, 32], sizes = [1, 32], strides = [1, 1]} : vector<8x128xf32> to vector<1x32xf32>
    %c4_162 = arith.constant 4 : index
    %c0_163 = arith.constant 0 : index
    %185 = vector.load %arg8[%c4_162, %c0_163] : memref<6x256xf32, #tpu.memory_space<vmem>>, vector<1x32xf32>
    tpu.vector_store %arg8[%c4_162, %c0_163], %184 {strides = array<i32>} : memref<6x256xf32, #tpu.memory_space<vmem>>, vector<1x32xf32>,
    %186 = vector.extract_strided_slice %181 {offsets = [0, 64], sizes = [1, 32], strides = [1, 1]} : vector<8x128xf32> to vector<1x32xf32>
    %c5_164 = arith.constant 5 : index
    %c0_165 = arith.constant 0 : index
    %187 = vector.load %arg8[%c5_164, %c0_165] : memref<6x256xf32, #tpu.memory_space<vmem>>, vector<1x32xf32>
    tpu.vector_store %arg8[%c5_164, %c0_165], %186 {strides = array<i32>} : memref<6x256xf32, #tpu.memory_space<vmem>>, vector<1x32xf32>,
    %188 = vector.extract_strided_slice %181 {offsets = [1, 0], sizes = [1, 32], strides = [1, 1]} : vector<8x128xf32> to vector<1x32xf32>
    %c3_166 = arith.constant 3 : index
    %c32_167 = arith.constant 32 : index
    %189 = vector.load %arg8[%c3_166, %c32_167] : memref<6x256xf32, #tpu.memory_space<vmem>>, vector<1x32xf32>
    tpu.vector_store %arg8[%c3_166, %c32_167], %188 {strides = array<i32>} : memref<6x256xf32, #tpu.memory_space<vmem>>, vector<1x32xf32>,
    %190 = vector.extract_strided_slice %181 {offsets = [1, 32], sizes = [1, 32], strides = [1, 1]} : vector<8x128xf32> to vector<1x32xf32>
    %c4_168 = arith.constant 4 : index
    %c32_169 = arith.constant 32 : index
    %191 = vector.load %arg8[%c4_168, %c32_169] : memref<6x256xf32, #tpu.memory_space<vmem>>, vector<1x32xf32>
    tpu.vector_store %arg8[%c4_168, %c32_169], %190 {strides = array<i32>} : memref<6x256xf32, #tpu.memory_space<vmem>>, vector<1x32xf32>,
    %192 = vector.extract_strided_slice %181 {offsets = [1, 64], sizes = [1, 32], strides = [1, 1]} : vector<8x128xf32> to vector<1x32xf32>
    %c5_170 = arith.constant 5 : index
    %c32_171 = arith.constant 32 : index
    %193 = vector.load %arg8[%c5_170, %c32_171] : memref<6x256xf32, #tpu.memory_space<vmem>>, vector<1x32xf32>
    tpu.vector_store %arg8[%c5_170, %c32_171], %192 {strides = array<i32>} : memref<6x256xf32, #tpu.memory_space<vmem>>, vector<1x32xf32>,
    %194 = vector.extract_strided_slice %181 {offsets = [2, 0], sizes = [1, 32], strides = [1, 1]} : vector<8x128xf32> to vector<1x32xf32>
    %c3_172 = arith.constant 3 : index
    %c64_173 = arith.constant 64 : index
    %195 = vector.load %arg8[%c3_172, %c64_173] : memref<6x256xf32, #tpu.memory_space<vmem>>, vector<1x32xf32>
    tpu.vector_store %arg8[%c3_172, %c64_173], %194 {strides = array<i32>} : memref<6x256xf32, #tpu.memory_space<vmem>>, vector<1x32xf32>,
    %196 = vector.extract_strided_slice %181 {offsets = [2, 32], sizes = [1, 32], strides = [1, 1]} : vector<8x128xf32> to vector<1x32xf32>
    %c4_174 = arith.constant 4 : index
    %c64_175 = arith.constant 64 : index
    %197 = vector.load %arg8[%c4_174, %c64_175] : memref<6x256xf32, #tpu.memory_space<vmem>>, vector<1x32xf32>
    tpu.vector_store %arg8[%c4_174, %c64_175], %196 {strides = array<i32>} : memref<6x256xf32, #tpu.memory_space<vmem>>, vector<1x32xf32>,
    %198 = vector.extract_strided_slice %181 {offsets = [2, 64], sizes = [1, 32], strides = [1, 1]} : vector<8x128xf32> to vector<1x32xf32>
    %c5_176 = arith.constant 5 : index
    %c64_177 = arith.constant 64 : index
    %199 = vector.load %arg8[%c5_176, %c64_177] : memref<6x256xf32, #tpu.memory_space<vmem>>, vector<1x32xf32>
    tpu.vector_store %arg8[%c5_176, %c64_177], %198 {strides = array<i32>} : memref<6x256xf32, #tpu.memory_space<vmem>>, vector<1x32xf32>,
    %200 = vector.extract_strided_slice %181 {offsets = [3, 0], sizes = [1, 32], strides = [1, 1]} : vector<8x128xf32> to vector<1x32xf32>
    %c3_178 = arith.constant 3 : index
    %c96_179 = arith.constant 96 : index
    %201 = vector.load %arg8[%c3_178, %c96_179] : memref<6x256xf32, #tpu.memory_space<vmem>>, vector<1x32xf32>
    tpu.vector_store %arg8[%c3_178, %c96_179], %200 {strides = array<i32>} : memref<6x256xf32, #tpu.memory_space<vmem>>, vector<1x32xf32>,
    %202 = vector.extract_strided_slice %181 {offsets = [3, 32], sizes = [1, 32], strides = [1, 1]} : vector<8x128xf32> to vector<1x32xf32>
    %c4_180 = arith.constant 4 : index
    %c96_181 = arith.constant 96 : index
    %203 = vector.load %arg8[%c4_180, %c96_181] : memref<6x256xf32, #tpu.memory_space<vmem>>, vector<1x32xf32>
    tpu.vector_store %arg8[%c4_180, %c96_181], %202 {strides = array<i32>} : memref<6x256xf32, #tpu.memory_space<vmem>>, vector<1x32xf32>,
    %204 = vector.extract_strided_slice %181 {offsets = [3, 64], sizes = [1, 32], strides = [1, 1]} : vector<8x128xf32> to vector<1x32xf32>
    %c5_182 = arith.constant 5 : index
    %c96_183 = arith.constant 96 : index
    %205 = vector.load %arg8[%c5_182, %c96_183] : memref<6x256xf32, #tpu.memory_space<vmem>>, vector<1x32xf32>
    tpu.vector_store %arg8[%c5_182, %c96_183], %204 {strides = array<i32>} : memref<6x256xf32, #tpu.memory_space<vmem>>, vector<1x32xf32>,
    %206 = vector.extract_strided_slice %181 {offsets = [4, 0], sizes = [1, 32], strides = [1, 1]} : vector<8x128xf32> to vector<1x32xf32>
    %c3_184 = arith.constant 3 : index
    %c128_185 = arith.constant 128 : index
    %207 = vector.load %arg8[%c3_184, %c128_185] : memref<6x256xf32, #tpu.memory_space<vmem>>, vector<1x32xf32>
    tpu.vector_store %arg8[%c3_184, %c128_185], %206 {strides = array<i32>} : memref<6x256xf32, #tpu.memory_space<vmem>>, vector<1x32xf32>,
    %208 = vector.extract_strided_slice %181 {offsets = [4, 32], sizes = [1, 32], strides = [1, 1]} : vector<8x128xf32> to vector<1x32xf32>
    %c4_186 = arith.constant 4 : index
    %c128_187 = arith.constant 128 : index
    %209 = vector.load %arg8[%c4_186, %c128_187] : memref<6x256xf32, #tpu.memory_space<vmem>>, vector<1x32xf32>
    tpu.vector_store %arg8[%c4_186, %c128_187], %208 {strides = array<i32>} : memref<6x256xf32, #tpu.memory_space<vmem>>, vector<1x32xf32>,
    %210 = vector.extract_strided_slice %181 {offsets = [4, 64], sizes = [1, 32], strides = [1, 1]} : vector<8x128xf32> to vector<1x32xf32>
    %c5_188 = arith.constant 5 : index
    %c128_189 = arith.constant 128 : index
    %211 = vector.load %arg8[%c5_188, %c128_189] : memref<6x256xf32, #tpu.memory_space<vmem>>, vector<1x32xf32>
    tpu.vector_store %arg8[%c5_188, %c128_189], %210 {strides = array<i32>} : memref<6x256xf32, #tpu.memory_space<vmem>>, vector<1x32xf32>,
    %212 = vector.extract_strided_slice %181 {offsets = [5, 0], sizes = [1, 32], strides = [1, 1]} : vector<8x128xf32> to vector<1x32xf32>
    %c3_190 = arith.constant 3 : index
    %c160_191 = arith.constant 160 : index
    %213 = vector.load %arg8[%c3_190, %c160_191] : memref<6x256xf32, #tpu.memory_space<vmem>>, vector<1x32xf32>
    tpu.vector_store %arg8[%c3_190, %c160_191], %212 {strides = array<i32>} : memref<6x256xf32, #tpu.memory_space<vmem>>, vector<1x32xf32>,
    %214 = vector.extract_strided_slice %181 {offsets = [5, 32], sizes = [1, 32], strides = [1, 1]} : vector<8x128xf32> to vector<1x32xf32>
    %c4_192 = arith.constant 4 : index
    %c160_193 = arith.constant 160 : index
    %215 = vector.load %arg8[%c4_192, %c160_193] : memref<6x256xf32, #tpu.memory_space<vmem>>, vector<1x32xf32>
    tpu.vector_store %arg8[%c4_192, %c160_193], %214 {strides = array<i32>} : memref<6x256xf32, #tpu.memory_space<vmem>>, vector<1x32xf32>,
    %216 = vector.extract_strided_slice %181 {offsets = [5, 64], sizes = [1, 32], strides = [1, 1]} : vector<8x128xf32> to vector<1x32xf32>
    %c5_194 = arith.constant 5 : index
    %c160_195 = arith.constant 160 : index
    %217 = vector.load %arg8[%c5_194, %c160_195] : memref<6x256xf32, #tpu.memory_space<vmem>>, vector<1x32xf32>
    tpu.vector_store %arg8[%c5_194, %c160_195], %216 {strides = array<i32>} : memref<6x256xf32, #tpu.memory_space<vmem>>, vector<1x32xf32>,
    %218 = vector.extract_strided_slice %181 {offsets = [6, 0], sizes = [1, 32], strides = [1, 1]} : vector<8x128xf32> to vector<1x32xf32>
    %c3_196 = arith.constant 3 : index
    %c192_197 = arith.constant 192 : index
    %219 = vector.load %arg8[%c3_196, %c192_197] : memref<6x256xf32, #tpu.memory_space<vmem>>, vector<1x32xf32>
    tpu.vector_store %arg8[%c3_196, %c192_197], %218 {strides = array<i32>} : memref<6x256xf32, #tpu.memory_space<vmem>>, vector<1x32xf32>,
    %220 = vector.extract_strided_slice %181 {offsets = [6, 32], sizes = [1, 32], strides = [1, 1]} : vector<8x128xf32> to vector<1x32xf32>
    %c4_198 = arith.constant 4 : index
    %c192_199 = arith.constant 192 : index
    %221 = vector.load %arg8[%c4_198, %c192_199] : memref<6x256xf32, #tpu.memory_space<vmem>>, vector<1x32xf32>
    tpu.vector_store %arg8[%c4_198, %c192_199], %220 {strides = array<i32>} : memref<6x256xf32, #tpu.memory_space<vmem>>, vector<1x32xf32>,
    %222 = vector.extract_strided_slice %181 {offsets = [6, 64], sizes = [1, 32], strides = [1, 1]} : vector<8x128xf32> to vector<1x32xf32>
    %c5_200 = arith.constant 5 : index
    %c192_201 = arith.constant 192 : index
    %223 = vector.load %arg8[%c5_200, %c192_201] : memref<6x256xf32, #tpu.memory_space<vmem>>, vector<1x32xf32>
    tpu.vector_store %arg8[%c5_200, %c192_201], %222 {strides = array<i32>} : memref<6x256xf32, #tpu.memory_space<vmem>>, vector<1x32xf32>,
    %224 = vector.extract_strided_slice %181 {offsets = [7, 0], sizes = [1, 32], strides = [1, 1]} : vector<8x128xf32> to vector<1x32xf32>
    %c3_202 = arith.constant 3 : index
    %c224_203 = arith.constant 224 : index
    %225 = vector.load %arg8[%c3_202, %c224_203] : memref<6x256xf32, #tpu.memory_space<vmem>>, vector<1x32xf32>
    tpu.vector_store %arg8[%c3_202, %c224_203], %224 {strides = array<i32>} : memref<6x256xf32, #tpu.memory_space<vmem>>, vector<1x32xf32>,
    %226 = vector.extract_strided_slice %181 {offsets = [7, 32], sizes = [1, 32], strides = [1, 1]} : vector<8x128xf32> to vector<1x32xf32>
    %c4_204 = arith.constant 4 : index
    %c224_205 = arith.constant 224 : index
    %227 = vector.load %arg8[%c4_204, %c224_205] : memref<6x256xf32, #tpu.memory_space<vmem>>, vector<1x32xf32>
    tpu.vector_store %arg8[%c4_204, %c224_205], %226 {strides = array<i32>} : memref<6x256xf32, #tpu.memory_space<vmem>>, vector<1x32xf32>,
    %228 = vector.extract_strided_slice %181 {offsets = [7, 64], sizes = [1, 32], strides = [1, 1]} : vector<8x128xf32> to vector<1x32xf32>
    %c5_206 = arith.constant 5 : index
    %c224_207 = arith.constant 224 : index
    %229 = vector.load %arg8[%c5_206, %c224_207] : memref<6x256xf32, #tpu.memory_space<vmem>>, vector<1x32xf32>
    tpu.vector_store %arg8[%c5_206, %c224_207], %228 {strides = array<i32>} : memref<6x256xf32, #tpu.memory_space<vmem>>, vector<1x32xf32>,
    return
  }
  func.func @transform_0(%arg0: i32) -> (i32, i32) {
    %c0_i32 = arith.constant 0 : i32
    %c0_i32_0 = arith.constant 0 : i32
    %c0_i32_1 = arith.constant 0 : i32
    return %c0_i32, %c0_i32_0 : i32, i32
  }
  func.func @transform_1(%arg0: i32) -> (i32, i32) {
    %c0_i32 = arith.constant 0 : i32
    %c0_i32_0 = arith.constant 0 : i32
    %c0_i32_1 = arith.constant 0 : i32
    return %c0_i32, %c0_i32_0 : i32, i32
  }
  func.func @transform_2(%arg0: i32) -> (i32, i32) {
    %c0_i32 = arith.constant 0 : i32
    %c0_i32_0 = arith.constant 0 : i32
    %c0_i32_1 = arith.constant 0 : i32
    return %c0_i32, %c0_i32_0 : i32, i32
  }
  func.func @transform_3(%arg0: i32) -> (i32, i32, i32) {
    %c0_i32 = arith.constant 0 : i32
    %c0_i32_0 = arith.constant 0 : i32
    %c0_i32_1 = arith.constant 0 : i32
    %c0_i32_2 = arith.constant 0 : i32
    return %c0_i32, %c0_i32_0, %c0_i32_1 : i32, i32, i32
  }
  func.func @transform_4(%arg0: i32) -> (i32, i32) {
    %c0_i32 = arith.constant 0 : i32
    %c0_i32_0 = arith.constant 0 : i32
    %c0_i32_1 = arith.constant 0 : i32
    return %c0_i32, %c0_i32_0 : i32, i32
  }
  func.func @transform_5(%arg0: i32) -> (i32, i32, i32) {
    %c0_i32 = arith.constant 0 : i32
    %c0_i32_0 = arith.constant 0 : i32
    %c0_i32_1 = arith.constant 0 : i32
    %c0_i32_2 = arith.constant 0 : i32
    return %c0_i32, %c0_i32_0, %c0_i32_1 : i32, i32, i32
  }
  func.func @transform_6(%arg0: i32) -> (i32, i32) {
    %c0_i32 = arith.constant 0 : i32
    %c0_i32_0 = arith.constant 0 : i32
    %c0_i32_1 = arith.constant 0 : i32
    return %c0_i32, %c0_i32_0 : i32, i32
  }
  func.func @transform_7(%arg0: i32) -> (i32, i32) {
    %c0_i32 = arith.constant 0 : i32
    %c0_i32_0 = arith.constant 0 : i32
    %c0_i32_1 = arith.constant 0 : i32
    return %c0_i32, %c0_i32_0 : i32, i32
  }
}

</mosaic_0001>

<bundles_post_ra>
// kernel: _lambda_.1
= control target key start
LH: loop header
LB: loop body
LE: loop exit
PB: predicated region body
PF: predicated region fallthrough
CT: control target
= control target key end

     0   :  { %12 = vsyncpa [#allocation5], 0  ;;  %s2885_s0 = inlined_call_operand.vmem [shape: f32[16,16], index: 0, kind: input, shape index: {}]   ;;  %s2886_s1 = inlined_call_operand.vmem [shape: f32[16,128], index: 1, kind: input, shape index: {}]   ;;  %s2887_s2 = inlined_call_operand.vmem [shape: f32[1,128], index: 2, kind: input, shape index: {}]   ;;  %s2888_s3 = inlined_call_operand.hbm [shape: f32[3,128,256], index: 3, kind: input, shape index: {}]   ;;  %s2889_s4 = inlined_call_operand.vmem [shape: f32[1,256], index: 4, kind: input, shape index: {}]   ;;  %s2890_s5 = inlined_call_operand.hbm [shape: f32[3,128,128], index: 5, kind: input, shape index: {}]   ;;  %s2891_s6 = inlined_call_operand.vmem [shape: f32[1,128], index: 6, kind: input, shape index: {}]   ;;  %s2892_s7 = inlined_call_operand.vmem [shape: f32[6,256], index: 7, kind: output, shape index: {}]  }
   0x1   :  { %13 = vsyncpa [#allocation7], 0  ;;  %s2352_s24 = smov [#allocation4]   ;;  %s2304_s28 = scalar_lea.hbm %s2888_s3, 12288 }
   0x2   :  { %s25_s25 = sshll.u32 %s2352_s24, 4  ;;  %p2305_p0 = scmp.ne.s32.totalorder %s2888_s3, %s2304_s28  ;;  %s26_s25 = int_to_ptr.vmem [resolvable:$true] %s25_s25 }
   0x3   :  { %p2308_p1 = scmp.lt.u32.totalorder %s2304_s28, %s2888_s3 }
   0x5   :  { %p2310_p2 = pnand %p2308_p1, %p2305_p0 }
   0x7   :  { %2313 = shalt.err (!%p2310_p2)
}
   0x8   :  { %s2314_s10 = scalar_lea.vmem %s26_s25, 12288  ;;  %p2319_p4 = scmp.lt.s32.totalorder %s26_s25, %s26_s25 }
   0x9   :  { %p2315_p3 = scmp.ne.s32.totalorder %s26_s25, %s2314_s10  ;;  %p2320_p5 = scmp.lt.s32.totalorder %s2314_s10, %s2314_s10 }
   0xb   :  { %p2321_p6 = por %p2320_p5, %p2319_p4 }
   0xd   :  { %p2322_p7 = pnand %p2321_p6, %p2315_p3 }
   0xf   :  { %2325 = shalt.err (!%p2322_p7)
}
  0x10   :  { %s2353_s11 = smov 256   ;;  %s2354_s12 = smov 16  }
  0x11   :  { %31 = dma.hbm_to_vmem [thread:$0]  %s2888_s3, 12288, %s26_s25, [#allocation5], %s2353_s11, %s2353_s11, %s2354_s12  }
  0x12   :  { %s2355_s15 = smov [#allocation6]   ;;  %s2326_s19 = scalar_lea.hbm %s2890_s5, 6144 }
  0x13   :  { %s39_s16 = sshll.u32 %s2355_s15, 4  ;;  %p2327_p8 = scmp.ne.s32.totalorder %s2890_s5, %s2326_s19  ;;  %s40_s16 = int_to_ptr.vmem [resolvable:$true] %s39_s16 }
  0x14   :  { %p2330_p9 = scmp.lt.u32.totalorder %s2326_s19, %s2890_s5 }
  0x16   :  { %p2332_p10 = pnand %p2330_p9, %p2327_p8 }
  0x18   :  { %2335 = shalt.err (!%p2332_p10)
}
  0x19   :  { %s2336_s24 = scalar_lea.vmem %s40_s16, 6144  ;;  %p2341_p12 = scmp.lt.s32.totalorder %s40_s16, %s40_s16 }
  0x1a   :  { %p2337_p11 = scmp.ne.s32.totalorder %s40_s16, %s2336_s24  ;;  %p2342_p13 = scmp.lt.s32.totalorder %s2336_s24, %s2336_s24 }
  0x1c   :  { %p2343_p0 = por %p2342_p13, %p2341_p12 }
  0x1e   :  { %p2344_p1 = pnand %p2343_p0, %p2337_p11 }
  0x20   :  { %2347 = shalt.err (!%p2344_p1)
}
  0x21   :  { %s2356_s3 = smov 128   ;;  %s2357_s25 = smov 8  }
  0x22   :  { %45 = dma.hbm_to_vmem [thread:$0]  %s2890_s5, 6144, %s40_s16, [#allocation7], %s2356_s3, %s2356_s3, %s2357_s25  }
  0x23   :  { %2348 = dma.done.wait [#allocation5], 12288  }
  0x24   :  { %2349 = vsyncadd [#allocation5], 4294955008 }
  0x25   :  { %2350 = dma.done.wait [#allocation7], 6144  }
  0x26   :  { %2351 = vsyncadd [#allocation7], 4294961152  ;;  %vm71_vm0 = vcmask 130048   ;;  %v62_v0 = vld [vmem:[%s2886_s1] sm:$0xff]  ;;  %v63_v1 = vld [vmem:[%s2886_s1 + $0x8] sm:$0xff]  ;;  %v2358_v12 = vmov 0.0  }
  0x27   :  { %v60_v2 = vld [vmem:[%s2885_s0] sm:$0xff]  ;;  %v1938_v3 = vpack.c.bf16 %v63_v1, %v62_v0  ;;  %v61_v4 = vld [vmem:[%s2885_s0 + $0x8] sm:$0xff]  ;;  %v202_v5 = vld [vmem:[#allocation4 + $0x108] sm:$0xff]  ;;  %54 = vst [vmem:[#allocation2] sm:$0xff] %v2358_v12  ;;  %297 = vmatprep.mubr.f32.mxu1 %v2358_v12  ;;  %s2359_s13 = smov 112   ;;  %vm157_vm1 = vcmask 385152  }
  0x28   :  { %1725 = vmatprep.mubr.msk.f32.mxu0 %vm71_vm0, %v60_v2  ;;  %v204_v6 = vld [vmem:[#allocation4 + $0x118] sm:$0xff]  ;;  %v201_v7 = vld [vmem:[#allocation4 + $0x100] sm:$0xff]  ;;  %v203_v9 = vld [vmem:[#allocation4 + $0x110] sm:$0xff]  ;;  %55 = vst [vmem:[#allocation2 + $0x8] sm:$0xff] %v2358_v12  ;;  %vm163_vm2 = vcmask 386177   ;;  %vm2361_vm3 = vmmov 0  }
  0x29   :  { %1939 = vmatprep.subr.bf16.mxu0 %v1938_v3  ;;  %v1942_v8 = vpack.c.bf16 %v204_v6, %v202_v5  ;;  %v206_v10 = vld [vmem:[#allocation4 + $0x128] sm:$0xff]  ;;  %v208_v11 = vld [vmem:[#allocation4 + $0x138] sm:$0xff]  ;;  %56 = vst [vmem:[#allocation3] sm:$0xff] %v2358_v12  ;;  %57 = vst [vmem:[#allocation3 + $0x8] sm:$0xff] %v2358_v12  ;;  %v1944_v13 = vpack.c.bf16 %v203_v9, %v201_v7  ;;  %vm502_vm4 = vcmask 581696   ;;  %vm517_vm5 = vcmask 582721  }
  0x2a   :  { %1941 = vmatpush3.bf16.msra.mxu0 %v1938_v3  ;;  %58 = vst [vmem:[#allocation3 + $0x10] sm:$0xff] %v2358_v12  ;;  %59 = vst [vmem:[#allocation3 + $0x18] sm:$0xff] %v2358_v12  ;;  %v1946_v14 = vpack.c.bf16 %v208_v11, %v206_v10  ;;  %v205_v15 = vld [vmem:[#allocation4 + $0x120] sm:$0xff]  ;;  %v207_v16 = vld [vmem:[#allocation4 + $0x130] sm:$0xff]  ;;  %vm1147_vm6 = vcmask 253952   ;;  %s2363_s18 = smov 64  }
  0x2b   :  { %v210_v17 = vld [vmem:[#allocation4 + $0x148] sm:$0xff]  ;;  %1943 = vmatprep.subr.bf16.mxu1 %v1942_v8  ;;  %2039 = vmatprep.subr.bf16.mxu0 %v1942_v8  ;;  %v212_v18 = vld [vmem:[#allocation4 + $0x158] sm:$0xff]  ;;  %v1948_v19 = vpack.c.bf16 %v207_v16, %v205_v15  ;;  %v209_v21 = vld [vmem:[#allocation4 + $0x140] sm:$0xff]  ;;  %s2364_s19 = smov 96   ;;  %s2365_s23 = smov 32   ;;  %vm1162_vm7 = vcmask 516352  }
  0x2c   :  { %1945 = vmatpush1.bf16.msra.mxu1 %v1944_v13  ;;  %v1950_v20 = vpack.c.bf16 %v212_v18, %v210_v17  ;;  %v211_v22 = vld [vmem:[#allocation4 + $0x150] sm:$0xff]  ;;  %v214_v23 = vld [vmem:[#allocation4 + $0x168] sm:$0xff]  ;;  %v216_v24 = vld [vmem:[#allocation4 + $0x178] sm:$0xff]  ;;  %vm1174_vm8 = vcmask 778752   ;;  %vm1186_vm9 = vcmask 1041152  }
  0x2d   :  { %1726 = vmatmul.mubr.msk.f32.vlgmr.msra.gmra.mrb[0].mxu0 %vm71_vm0, %v61_v4  ;;  %1947 = vmatprep.subr.bf16.mxu1 %v1946_v14  ;;  %v1952_v25 = vpack.c.bf16 %v211_v22, %v209_v21  ;;  %v1954_v26 = vpack.c.bf16 %v216_v24, %v214_v23  ;;  %v213_v27 = vld [vmem:[#allocation4 + $0x160] sm:$0xff]  ;;  %v215_v28 = vld [vmem:[#allocation4 + $0x170] sm:$0xff]  ;;  %v218_v29 = vld [vmem:[#allocation4 + $0x188] sm:$0xff] }
  0x2e   :  { %652 = vmatprep.mubr.f32.mxu0 %v2358_v12  ;;  %2041 = vmatpush1.bf16.msra.mxu0 %v1944_v13  ;;  %v220_v30 = vld [vmem:[#allocation4 + $0x198] sm:$0xff]  ;;  %v1956_v31 = vpack.c.bf16 %v215_v28, %v213_v27  ;;  %v217_v33 = vld [vmem:[#allocation4 + $0x180] sm:$0xff]  ;;  %v219_v34 = vld [vmem:[#allocation4 + $0x190] sm:$0xff] }
  0x2f   :  { %2043 = vmatprep.subr.bf16.mxu0 %v1946_v14  ;;  %v1958_v32 = vpack.c.bf16 %v220_v30, %v218_v29  ;;  %v222_v35 = vld [vmem:[#allocation4 + $0x1a8] sm:$0xff]  ;;  %v224_v36 = vld [vmem:[#allocation4 + $0x1b8] sm:$0xff]  ;;  %v1960_v37 = vpack.c.bf16 %v219_v34, %v217_v33  ;;  %v221_v39 = vld [vmem:[#allocation4 + $0x1a0] sm:$0xff] }
  0x30   :  { %1949 = vmatpush1.bf16.msra.mxu1 %v1948_v19  ;;  %v1962_v38 = vpack.c.bf16 %v224_v36, %v222_v35  ;;  %v223_v40 = vld [vmem:[#allocation4 + $0x1b0] sm:$0xff]  ;;  %v226_v42 = vld [vmem:[#allocation4 + $0x1c8] sm:$0xff]  ;;  %v228_v43 = vld [vmem:[#allocation4 + $0x1d8] sm:$0xff] }
  0x31   :  { %1951 = vmatprep.subr.bf16.mxu1 %v1950_v20  ;;  %v1964_v41 = vpack.c.bf16 %v223_v40, %v221_v39  ;;  %v1966_v44 = vpack.c.bf16 %v228_v43, %v226_v42  ;;  %v225_v45 = vld [vmem:[#allocation4 + $0x1c0] sm:$0xff]  ;;  %v227_v46 = vld [vmem:[#allocation4 + $0x1d0] sm:$0xff]  ;;  %v230_v48 = vld [vmem:[#allocation4 + $0x1e8] sm:$0xff] }
  0x32   :  { %2045 = vmatpush1.bf16.msra.mxu0 %v1948_v19  ;;  %v1968_v47 = vpack.c.bf16 %v227_v46, %v225_v45  ;;  %v232_v49 = vld [vmem:[#allocation4 + $0x1f8] sm:$0xff]  ;;  %v229_v50 = vld [vmem:[#allocation4 + $0x1e0] sm:$0xff]  ;;  %v231_v52 = vld [vmem:[#allocation4 + $0x1f0] sm:$0xff] }
  0x33   :  { %2047 = vmatprep.subr.bf16.mxu0 %v1950_v20  ;;  %v1970_v51 = vpack.c.bf16 %v232_v49, %v230_v48  ;;  %v168_v53 = vld [vmem:[#allocation4 + $0x8] sm:$0xff]  ;;  %v170_v54 = vld [vmem:[#allocation4 + $0x18] sm:$0xff]  ;;  %v1610_v55 = vld [vmem:[%s2887_s2] ss:$0 sm:$0xff]  ;;  %v1972_v56 = vpack.c.bf16 %v231_v52, %v229_v50 }
  0x34   :  { %1953 = vmatpush1.bf16.msra.mxu1 %v1952_v25  ;;  %v1974_v57 = vpack.c.bf16 %v170_v54, %v168_v53  ;;  %v167_v0 = vld [vmem:[#allocation4] sm:$0xff]  ;;  %v169_v1 = vld [vmem:[#allocation4 + $0x10] sm:$0xff]  ;;  %v172_v2 = vld [vmem:[#allocation4 + $0x28] sm:$0xff] }
  0x35   :  { %1955 = vmatprep.subr.bf16.mxu1 %v1954_v26  ;;  %v174_v3 = vld [vmem:[#allocation4 + $0x38] sm:$0xff]  ;;  %v1976_v4 = vpack.c.bf16 %v169_v1, %v167_v0  ;;  %v171_v6 = vld [vmem:[#allocation4 + $0x20] sm:$0xff]  ;;  %v173_v7 = vld [vmem:[#allocation4 + $0x30] sm:$0xff] }
  0x36   :  { %2049 = vmatpush1.bf16.msra.mxu0 %v1952_v25  ;;  %v1978_v5 = vpack.c.bf16 %v174_v3, %v172_v2  ;;  %v176_v8 = vld [vmem:[#allocation4 + $0x48] sm:$0xff]  ;;  %v178_v11 = vld [vmem:[#allocation4 + $0x58] sm:$0xff]  ;;  %v1980_v13 = vpack.c.bf16 %v173_v7, %v171_v6  ;;  %v175_v15 = vld [vmem:[#allocation4 + $0x40] sm:$0xff] }
  0x37   :  { %2051 = vmatprep.subr.bf16.mxu0 %v1954_v26  ;;  %v1982_v14 = vpack.c.bf16 %v178_v11, %v176_v8  ;;  %v177_v16 = vld [vmem:[#allocation4 + $0x50] sm:$0xff]  ;;  %v180_v17 = vld [vmem:[#allocation4 + $0x68] sm:$0xff]  ;;  %v182_v18 = vld [vmem:[#allocation4 + $0x78] sm:$0xff] }
  0x38   :  { %1957 = vmatpush1.bf16.msra.mxu1 %v1956_v31  ;;  %v1984_v19 = vpack.c.bf16 %v177_v16, %v175_v15  ;;  %v1986_v20 = vpack.c.bf16 %v182_v18, %v180_v17  ;;  %v179_v21 = vld [vmem:[#allocation4 + $0x60] sm:$0xff]  ;;  %v181_v22 = vld [vmem:[#allocation4 + $0x70] sm:$0xff]  ;;  %v184_v23 = vld [vmem:[#allocation4 + $0x88] sm:$0xff] }
  0x39   :  { %1959 = vmatprep.subr.bf16.mxu1 %v1958_v32  ;;  %v186_v24 = vld [vmem:[#allocation4 + $0x98] sm:$0xff]  ;;  %v1988_v25 = vpack.c.bf16 %v181_v22, %v179_v21  ;;  %v183_v27 = vld [vmem:[#allocation4 + $0x80] sm:$0xff]  ;;  %v185_v28 = vld [vmem:[#allocation4 + $0x90] sm:$0xff] }
  0x3a   :  { %2053 = vmatpush1.bf16.msra.mxu0 %v1956_v31  ;;  %v1990_v26 = vpack.c.bf16 %v186_v24, %v184_v23  ;;  %v188_v29 = vld [vmem:[#allocation4 + $0xa8] sm:$0xff]  ;;  %v190_v30 = vld [vmem:[#allocation4 + $0xb8] sm:$0xff]  ;;  %v1992_v31 = vpack.c.bf16 %v185_v28, %v183_v27  ;;  %v187_v33 = vld [vmem:[#allocation4 + $0xa0] sm:$0xff] }
  0x3b   :  { %2055 = vmatprep.subr.bf16.mxu0 %v1958_v32  ;;  %v1994_v32 = vpack.c.bf16 %v190_v30, %v188_v29  ;;  %v189_v34 = vld [vmem:[#allocation4 + $0xb0] sm:$0xff]  ;;  %v192_v35 = vld [vmem:[#allocation4 + $0xc8] sm:$0xff]  ;;  %v194_v36 = vld [vmem:[#allocation4 + $0xd8] sm:$0xff] }
  0x3c   :  { %1961 = vmatpush1.bf16.msra.mxu1 %v1960_v37  ;;  %v191_v39 = vld [vmem:[#allocation4 + $0xc0] sm:$0xff]  ;;  %v193_v40 = vld [vmem:[#allocation4 + $0xd0] sm:$0xff]  ;;  %v198_v42 = vld [vmem:[#allocation4 + $0xf8] sm:$0xff] }
  0x3d   :  { %1963 = vmatprep.subr.bf16.mxu1 %v1962_v38  ;;  %v2000_v43 = vpack.c.bf16 %v193_v40, %v191_v39  ;;  %v195_v45 = vld [vmem:[#allocation4 + $0xe0] sm:$0xff]  ;;  %v197_v46 = vld [vmem:[#allocation4 + $0xf0] sm:$0xff]  ;;  %v380_v48 = vld [vmem:[#allocation4 + $0x218] sm:$0xff]  ;;  %v2360_v40 = vmov 0.0|0.0  }
  0x3e   :  { %2057 = vmatpush1.bf16.msra.mxu0 %v1960_v37  ;;  %v1996_v37 = vpack.c.bf16 %v189_v34, %v187_v33  ;;  %v2004_v49 = vpack.c.bf16 %v197_v46, %v195_v45  ;;  %v379_v52 = vld [vmem:[#allocation4 + $0x210] sm:$0xff]  ;;  %v382_v53 = vld [vmem:[#allocation4 + $0x228] sm:$0xff]  ;;  %v384_v54 = vld [vmem:[#allocation4 + $0x238] sm:$0xff] }
  0x3f   :  { %2059 = vmatprep.subr.bf16.mxu0 %v1962_v38  ;;  %v1998_v38 = vpack.c.bf16 %v194_v36, %v192_v35  ;;  %v385_v1 = vld [vmem:[#allocation4 + $0x240] sm:$0xff]  ;;  %v387_v2 = vld [vmem:[#allocation4 + $0x250] sm:$0xff]  ;;  %v390_v3 = vld [vmem:[#allocation4 + $0x268] sm:$0xff] }
  0x40   :  { %1965 = vmatpush1.bf16.msra.mxu1 %v1964_v41  ;;  %v389_v7 = vld [vmem:[#allocation4 + $0x260] sm:$0xff]  ;;  %v391_v8 = vld [vmem:[#allocation4 + $0x270] sm:$0xff]  ;;  %v398_v16 = vld [vmem:[#allocation4 + $0x2a8] sm:$0xff] }
  0x41   :  { %1967 = vmatprep.subr.bf16.mxu1 %v1966_v44  ;;  %v2020_v11 = vpack.c.bf16 %v391_v8, %v389_v7  ;;  %v395_v15 = vld [vmem:[#allocation4 + $0x290] sm:$0xff]  ;;  %v400_v17 = vld [vmem:[#allocation4 + $0x2b8] sm:$0xff]  ;;  %v402_v22 = vld [vmem:[#allocation4 + $0x2c8] sm:$0xff] }
  0x42   :  { %2061 = vmatpush1.bf16.msra.mxu0 %v1964_v41  ;;  %v196_v41 = vld [vmem:[#allocation4 + $0xe8] sm:$0xff]  ;;  %v399_v21 = vld [vmem:[#allocation4 + $0x2b0] sm:$0xff]  ;;  %v404_v23 = vld [vmem:[#allocation4 + $0x2d8] sm:$0xff] }
  0x43   :  { %2063 = vmatprep.subr.bf16.mxu0 %v1966_v44  ;;  %v2002_v44 = vpack.c.bf16 %v198_v42, %v196_v41  ;;  %v403_v27 = vld [vmem:[#allocation4 + $0x2d0] sm:$0xff]  ;;  %v406_v28 = vld [vmem:[#allocation4 + $0x2e8] sm:$0xff]  ;;  %v408_v29 = vld [vmem:[#allocation4 + $0x2f8] sm:$0xff] }
  0x44   :  { %1969 = vmatpush1.bf16.msra.mxu1 %v1968_v47  ;;  %v407_v33 = vld [vmem:[#allocation4 + $0x2f0] sm:$0xff]  ;;  %v875_v39 = vld [vmem:[#allocation6] sm:$0xff]  ;;  %v876_v42 = vld [vmem:[#allocation6 + $0x8] sm:$0xff] }
  0x45   :  { %1971 = vmatprep.subr.bf16.mxu1 %v1970_v51  ;;  %v2464_v45 = vpack.c.bf16 %v876_v42, %v875_v39  ;;  %v877_v46 = vld [vmem:[#allocation6 + $0x10] sm:$0xff]  ;;  %v904_v8 = vld [vmem:[#allocation6 + $0xd8] sm:$0xff] }
  0x46   :  { %2065 = vmatpush1.bf16.msra.mxu0 %v1968_v47  ;;  %v378_v47 = vld [vmem:[#allocation4 + $0x208] sm:$0xff]  ;;  %v903_v7 = vld [vmem:[#allocation6 + $0xd0] sm:$0xff] }
  0x47   :  { %2067 = vmatprep.subr.bf16.mxu0 %v1970_v51  ;;  %v2006_v50 = vpack.c.bf16 %v380_v48, %v378_v47  ;;  %v377_v51 = vld [vmem:[#allocation4 + $0x200] sm:$0xff]  ;;  %v878_v47 = vld [vmem:[#allocation6 + $0x18] sm:$0xff] }
  0x48   :  { %1973 = vmatpush1.bf16.msra.mxu1 %v1972_v56 }
  0x49   :  { %1975 = vmatprep.subr.bf16.mxu1 %v1974_v57 }
  0x4a   :  { %2069 = vmatpush1.bf16.msra.mxu0 %v1972_v56  ;;  %v2010_v56 = vpack.c.bf16 %v384_v54, %v382_v53  ;;  %v880_v53 = vld [vmem:[#allocation6 + $0x28] sm:$0xff] }
  0x4b   :  { %2071 = vmatprep.subr.bf16.mxu0 %v1974_v57  ;;  %v381_v57 = vld [vmem:[#allocation4 + $0x220] sm:$0xff] }
 0x100   :  { %v1727_v58 = vpop.f32.mrb[0].mxu0 }
 0x101   :  { %v144_v59 = vpop.f32.mrb[1].mxu0  ;;  %v383_v58 = vld [vmem:[#allocation4 + $0x230] sm:$0xff] }
 0x102   :  { %v145_v60 = vadd.f32 %v1610_v55, %v144_v59  ;;  %v2008_v55 = vpack.c.bf16 %v379_v52, %v377_v51  ;;  %v386_v59 = vld [vmem:[#allocation4 + $0x248] sm:$0xff]  ;;  %v879_v52 = vld [vmem:[#allocation6 + $0x20] sm:$0xff] }
 0x103   :  { %v898_v51 = vld [vmem:[#allocation6 + $0xa8] sm:$0xff] }
 0x104   :  { %v152_v61 = vmax.f32 %v145_v60, 0.0 }
 0x106   :  { %154 = vrot.lane.b32.xlu0 %v152_v61, %s2354_s12 }
 0x10a   :  { %159 = vrot.lane.b32.xlu0 %v152_v61, %s2359_s13 }
 0x178   :  { %v155_v62 = vpop.permute.xlu0 %154 }
 0x179   :  { %158 = vst.msk [vmem:[#allocation2 + $0x1] sm:$0x1] %vm157_vm1, %v155_v62 }
 0x17a   :  { %164 = vst.msk [vmem:[#allocation2 + $0x8] sm:$0x2] %vm163_vm2, %v155_v62  ;;  %v388_v62 = vld [vmem:[#allocation4 + $0x258] sm:$0xff] }
 0x17b   :  { %v2014_v0 = vpack.c.bf16 %v388_v62, %v386_v59  ;;  %v882_v59 = vld [vmem:[#allocation6 + $0x38] sm:$0xff]  ;;  %v484_v62 = vlaneseq }
 0x17c   :  { %v160_v63 = vpop.permute.xlu0 %159 }
 0x17d   :  { %162 = vst.msk [vmem:[#allocation2 + $0x2] sm:$0x1] %vm157_vm1, %v160_v63 }
 0x17e   :  { %165 = vst.msk [vmem:[#allocation2 + $0x9] sm:$0x2] %vm163_vm2, %v160_v63  ;;  %v2012_v63 = vpack.c.bf16 %v383_v58, %v381_v57  ;;  %v900_v57 = vld [vmem:[#allocation6 + $0xb8] sm:$0xff]  ;;  %v881_v58 = vld [vmem:[#allocation6 + $0x30] sm:$0xff] }
 0x180   :  { %v166_v60 = vld [vmem:[#allocation2] sm:$0x3] }
 0x181   :  { %v522_v61 = vld [vmem:[#allocation2 + $0x8] sm:$0x3] }
 0x184   :  { %v199_v9 = vld [vmem:[#allocation2 + $0x1] sm:$0x3] }
 0x185   :  { %v555_v10 = vld [vmem:[#allocation2 + $0x9] sm:$0x3]  ;;  %298 = vmatmul.mubr.f32.vlgmr.msra.gmra.mrb[0].mxu1 %v199_v9  ;;  %v394_v9 = vld [vmem:[#allocation4 + $0x288] sm:$0xff]  ;;  %v375_v35 = vld [vmem:[#allocation2 + $0x2] sm:$0x3] }
 0x186   :  { %653 = vmatmul.mubr.f32.vlgmr.msra.gmra.mrb[2].mxu0 %v555_v10  ;;  %1977 = vmatpush1.bf16.msra.mxu1 %v1976_v4  ;;  %v396_v10 = vld [vmem:[#allocation4 + $0x298] sm:$0xff] }
 0x187   :  { %2073 = vmatpush1.bf16.msra.mxu0 %v1976_v4  ;;  %1979 = vmatprep.subr.bf16.mxu1 %v1978_v5  ;;  %v392_v4 = vld [vmem:[#allocation4 + $0x278] sm:$0xff] }
 0x188   :  { %2075 = vmatprep.subr.bf16.mxu0 %v1978_v5  ;;  %368 = vmatprep.mubr.f32.mxu1 %v2358_v12  ;;  %v2016_v5 = vpack.c.bf16 %v387_v2, %v385_v1  ;;  %v2018_v6 = vpack.c.bf16 %v392_v4, %v390_v3  ;;  %v730_v36 = vld [vmem:[#allocation2 + $0xa] sm:$0x3]  ;;  %v902_v1 = vld [vmem:[#allocation6 + $0xc8] sm:$0xff]  ;;  %v883_v2 = vld [vmem:[#allocation6 + $0x40] sm:$0xff] }
 0x189   :  { %723 = vmatprep.mubr.f32.mxu0 %v2358_v12  ;;  %v884_v4 = vld [vmem:[#allocation6 + $0x48] sm:$0xff] }
 0x18a   :  { %1981 = vmatpush1.bf16.msra.mxu1 %v1980_v13 }
 0x18b   :  { %2077 = vmatpush1.bf16.msra.mxu0 %v1980_v13  ;;  %1983 = vmatprep.subr.bf16.mxu1 %v1982_v14  ;;  %v2022_v13 = vpack.c.bf16 %v396_v10, %v394_v9  ;;  %v885_v9 = vld [vmem:[#allocation6 + $0x50] sm:$0xff] }
 0x18c   :  { %2079 = vmatprep.subr.bf16.mxu0 %v1982_v14  ;;  %v393_v14 = vld [vmem:[#allocation4 + $0x280] sm:$0xff]  ;;  %v482_v10 = vld [vmem:[%s2889_s4] sm:$0x3] }
 0x18d   :  { %v2024_v18 = vpack.c.bf16 %v395_v15, %v393_v14  ;;  %v886_v14 = vld [vmem:[#allocation6 + $0x58] sm:$0xff] }
 0x18e   :  { %1985 = vmatpush1.bf16.msra.mxu1 %v1984_v19  ;;  %v2507_v15 = vpack.c.bf16 %v886_v14, %v885_v9  ;;  %v1056_v9 = vld [vmem:[#allocation6 + $0x128] sm:$0xff] }
 0x18f   :  { %2081 = vmatpush1.bf16.msra.mxu0 %v1984_v19  ;;  %1987 = vmatprep.subr.bf16.mxu1 %v1986_v20  ;;  %v2026_v19 = vpack.c.bf16 %v400_v17, %v398_v16  ;;  %v836_v16 = vld [vmem:[%s2889_s4] sm:$0x3]  ;;  %s2362_s4 = smov 72  }
 0x190   :  { %2083 = vmatprep.subr.bf16.mxu0 %v1986_v20  ;;  %v397_v20 = vld [vmem:[#allocation4 + $0x2a0] sm:$0xff] }
 0x191   :  { %v2028_v24 = vpack.c.bf16 %v399_v21, %v397_v20  ;;  %v887_v20 = vld [vmem:[#allocation6 + $0x60] sm:$0xff] }
 0x192   :  { %1989 = vmatpush1.bf16.msra.mxu1 %v1988_v25 }
 0x193   :  { %2085 = vmatpush1.bf16.msra.mxu0 %v1988_v25  ;;  %1991 = vmatprep.subr.bf16.mxu1 %v1990_v26  ;;  %v2030_v25 = vpack.c.bf16 %v404_v23, %v402_v22  ;;  %v888_v23 = vld [vmem:[#allocation6 + $0x68] sm:$0xff] }
 0x194   :  { %2087 = vmatprep.subr.bf16.mxu0 %v1990_v26  ;;  %v401_v26 = vld [vmem:[#allocation4 + $0x2c0] sm:$0xff] }
 0x195   :  { %v2032_v30 = vpack.c.bf16 %v403_v27, %v401_v26 }
 0x196   :  { %1993 = vmatpush1.bf16.msra.mxu1 %v1992_v31 }
 0x197   :  { %2089 = vmatpush1.bf16.msra.mxu0 %v1992_v31  ;;  %1995 = vmatprep.subr.bf16.mxu1 %v1994_v32  ;;  %v2034_v31 = vpack.c.bf16 %v408_v29, %v406_v28 }
 0x198   :  { %2091 = vmatprep.subr.bf16.mxu0 %v1994_v32  ;;  %v405_v32 = vld [vmem:[#allocation4 + $0x2e0] sm:$0xff] }
 0x199   :  { %v2036_v34 = vpack.c.bf16 %v407_v33, %v405_v32  ;;  %v908_v32 = vld [vmem:[#allocation6 + $0xf8] sm:$0xff]  ;;  %v889_v33 = vld [vmem:[#allocation6 + $0x70] sm:$0xff] }
 0x19a   :  { %1997 = vmatpush1.bf16.msra.mxu1 %v1996_v37 }
 0x19b   :  { %2093 = vmatpush1.bf16.msra.mxu0 %v1996_v37  ;;  %1999 = vmatprep.subr.bf16.mxu1 %v1998_v38  ;;  %v893_v37 = vld [vmem:[#allocation6 + $0x80] sm:$0xff] }
 0x19c   :  { %2095 = vmatprep.subr.bf16.mxu0 %v1998_v38  ;;  %v894_v38 = vld [vmem:[#allocation6 + $0x88] sm:$0xff] }
 0x19d   :  { %v2462_v41 = vpack.c.bf16 %v894_v38, %v893_v37 }
 0x19e   :  { %2001 = vmatpush1.bf16.msra.mxu1 %v2000_v43 }
 0x19f   :  { %2097 = vmatpush1.bf16.msra.mxu0 %v2000_v43  ;;  %2003 = vmatprep.subr.bf16.mxu1 %v2002_v44  ;;  %v895_v43 = vld [vmem:[#allocation6 + $0x90] sm:$0xff] }
 0x1a0   :  { %2099 = vmatprep.subr.bf16.mxu0 %v2002_v44  ;;  %v896_v44 = vld [vmem:[#allocation6 + $0x98] sm:$0xff] }
 0x1a1   :  { %v2467_v48 = vpack.c.bf16 %v896_v44, %v895_v43 }
 0x1a2   :  { %2005 = vmatpush1.bf16.msra.mxu1 %v2004_v49 }
 0x1a3   :  { %2101 = vmatpush1.bf16.msra.mxu0 %v2004_v49  ;;  %2007 = vmatprep.subr.bf16.mxu1 %v2006_v50  ;;  %v2471_v49 = vpack.c.bf16 %v878_v47, %v877_v46 }
 0x1a4   :  { %2103 = vmatprep.subr.bf16.mxu0 %v2006_v50  ;;  %v897_v50 = vld [vmem:[#allocation6 + $0xa0] sm:$0xff] }
 0x1a5   :  { %369 = vmatmul.mubr.f32.vlgmr.msra.gmra.mrb[0].mxu1 %v166_v60  ;;  %v2475_v54 = vpack.c.bf16 %v898_v51, %v897_v50 }
 0x1a6   :  { %724 = vmatmul.mubr.f32.vlgmr.msra.gmra.mrb[2].mxu0 %v522_v61  ;;  %2009 = vmatpush1.bf16.msra.mxu1 %v2008_v55  ;;  %v2487_v61 = vpack.c.bf16 %v882_v59, %v881_v58  ;;  %v1051_v58 = vld [vmem:[#allocation6 + $0x100] sm:$0xff]  ;;  %v1052_v59 = vld [vmem:[#allocation6 + $0x108] sm:$0xff] }
 0x1a7   :  { %2105 = vmatpush1.bf16.msra.mxu0 %v2008_v55  ;;  %2011 = vmatprep.subr.bf16.mxu1 %v2010_v56  ;;  %v2479_v55 = vpack.c.bf16 %v880_v53, %v879_v52 }
 0x1a8   :  { %2107 = vmatprep.subr.bf16.mxu0 %v2010_v56  ;;  %473 = vmatprep.mubr.f32.mxu1 %v2358_v12  ;;  %v899_v56 = vld [vmem:[#allocation6 + $0xb0] sm:$0xff] }
 0x1a9   :  { %827 = vmatprep.mubr.f32.mxu0 %v2358_v12  ;;  %v2483_v60 = vpack.c.bf16 %v900_v57, %v899_v56 }
 0x1aa   :  { %2013 = vmatpush1.bf16.msra.mxu1 %v2012_v63 }
 0x1ab   :  { %2109 = vmatpush1.bf16.msra.mxu0 %v2012_v63  ;;  %2015 = vmatprep.subr.bf16.mxu1 %v2014_v0  ;;  %v485_v63 = vshrl.u32 %v484_v62, 7 }
 0x1ac   :  { %2111 = vmatprep.subr.bf16.mxu0 %v2014_v0  ;;  %v901_v0 = vld [vmem:[#allocation6 + $0xc0] sm:$0xff] }
 0x1ad   :  { %v2494_v3 = vpack.c.bf16 %v902_v1, %v901_v0  ;;  %v1053_v0 = vld [vmem:[#allocation6 + $0x110] sm:$0xff]  ;;  %v1054_v1 = vld [vmem:[#allocation6 + $0x118] sm:$0xff] }
 0x1ae   :  { %2017 = vmatpush1.bf16.msra.mxu1 %v2016_v5 }
 0x1af   :  { %2113 = vmatpush1.bf16.msra.mxu0 %v2016_v5  ;;  %2019 = vmatprep.subr.bf16.mxu1 %v2018_v6  ;;  %v2496_v5 = vpack.c.bf16 %v884_v4, %v883_v2 }
 0x1b0   :  { %2115 = vmatprep.subr.bf16.mxu0 %v2018_v6  ;;  %v486_v6 = vsub.s32 0, %v485_v63 }
 0x1b2   :  { %2021 = vmatpush1.bf16.msra.mxu1 %v2020_v11  ;;  %v487_v17 = vrot.slane %v482_v10, %v486_v6  ;;  %v841_v27 = vrot.slane %v836_v16, %v486_v6 }
 0x1b3   :  { %2117 = vmatpush1.bf16.msra.mxu0 %v2020_v11  ;;  %2023 = vmatprep.subr.bf16.mxu1 %v2022_v13  ;;  %v490_v11 = vsub.s32 1, %v485_v63  ;;  %v2554_v63 = vpack.c.bf16 %v1052_v59, %v1051_v58 }
 0x1b4   :  { %2119 = vmatprep.subr.bf16.mxu0 %v2022_v13  ;;  %v2505_v13 = vpack.c.bf16 %v904_v8, %v903_v7  ;;  %v2186_v7 = vpack.c.bf16 %v1054_v1, %v1053_v0  ;;  %v1055_v8 = vld [vmem:[#allocation6 + $0x120] sm:$0xff] }
 0x1b5   :  { %v491_v21 = vrot.slane %v482_v10, %v490_v11  ;;  %v845_v43 = vrot.slane %v836_v16, %v490_v11  ;;  %v2189_v10 = vpack.c.bf16 %v1056_v9, %v1055_v8  ;;  %v1058_v11 = vld [vmem:[#allocation6 + $0x138] sm:$0xff]  ;;  %v1059_v16 = vld [vmem:[#allocation6 + $0x140] sm:$0xff] }
 0x1b6   :  { %2025 = vmatpush1.bf16.msra.mxu1 %v2024_v18 }
 0x1b7   :  { %2121 = vmatpush1.bf16.msra.mxu0 %v2024_v18  ;;  %2027 = vmatprep.subr.bf16.mxu1 %v2026_v19  ;;  %v905_v18 = vld [vmem:[#allocation6 + $0xe0] sm:$0xff] }
 0x1b8   :  { %2123 = vmatprep.subr.bf16.mxu0 %v2026_v19  ;;  %v906_v19 = vld [vmem:[#allocation6 + $0xe8] sm:$0xff] }
 0x1b9   :  { %v2516_v22 = vpack.c.bf16 %v906_v19, %v905_v18  ;;  %v1061_v18 = vld [vmem:[#allocation6 + $0x150] sm:$0xff]  ;;  %v1062_v19 = vld [vmem:[#allocation6 + $0x158] sm:$0xff] }
 0x1ba   :  { %2029 = vmatpush1.bf16.msra.mxu1 %v2028_v24 }
 0x1bb   :  { %2125 = vmatpush1.bf16.msra.mxu0 %v2028_v24  ;;  %2031 = vmatprep.subr.bf16.mxu1 %v2030_v25  ;;  %v2518_v24 = vpack.c.bf16 %v888_v23, %v887_v20  ;;  %v1063_v20 = vld [vmem:[#allocation6 + $0x160] sm:$0xff]  ;;  %v1065_v23 = vld [vmem:[#allocation6 + $0x170] sm:$0xff] }
 0x1bc   :  { %2127 = vmatprep.subr.bf16.mxu0 %v2030_v25 }
 0x1be   :  { %2033 = vmatpush1.bf16.msra.mxu1 %v2032_v30 }
 0x1bf   :  { %2129 = vmatpush1.bf16.msra.mxu0 %v2032_v30  ;;  %2035 = vmatprep.subr.bf16.mxu1 %v2034_v31 }
 0x1c0   :  { %2131 = vmatprep.subr.bf16.mxu0 %v2034_v31  ;;  %v907_v31 = vld [vmem:[#allocation6 + $0xf0] sm:$0xff] }
 0x1c2   :  { %2037 = vmatpush1.bf16.msra.mxu1 %v2036_v34 }
 0x1c3   :  { %2133 = vmatpush1.bf16.msra.mxu0 %v2036_v34  ;;  %2134 = vmatprep.subr.bf16.mxu1 %v2360_v40 }
 0x1c4   :  { %2158 = vmatprep.subr.bf16.mxu0 %v2360_v40 }
 0x1c5   :  { %474 = vmatmul.mubr.f32.vlgmr.msra.gmra.mrb[0].mxu1 %v375_v35  ;;  %v2524_v35 = vpack.c.bf16 %v908_v32, %v907_v31 }
 0x1c6   :  { %828 = vmatmul.mubr.f32.vlgmr.msra.gmra.mrb[2].mxu0 %v730_v36  ;;  %2136 = vmatpush3.bf16.msra.mxu1 %v2462_v41  ;;  %v890_v36 = vld [vmem:[#allocation6 + $0x78] sm:$0xff] }
 0x1c7   :  { %2160 = vmatpush3.bf16.msra.mxu0 %v2464_v45  ;;  %2137 = vmatprep.subr.bf16.mxu1 %v2360_v40  ;;  %v2526_v38 = vpack.c.bf16 %v890_v36, %v889_v33 }
 0x1c8   :  { %2161 = vmatprep.subr.bf16.mxu0 %v2360_v40  ;;  %1760 = vmatprep.mubr.msk.f32.mxu1 %vm2361_vm3, %v2358_v12 }
 0x1c9   :  { %1795 = vmatprep.mubr.msk.f32.mxu0 %vm2361_vm3, %v2358_v12 }
 0x1ca   :  { %2139 = vmatpush3.bf16.msra.mxu1 %v2467_v48 }
 0x1cb   :  { %2163 = vmatpush3.bf16.msra.mxu0 %v2471_v49  ;;  %2140 = vmatprep.subr.bf16.mxu1 %v2360_v40 }
 0x1cc   :  { %2164 = vmatprep.subr.bf16.mxu0 %v2360_v40 }
 0x1ce   :  { %2142 = vmatpush3.bf16.msra.mxu1 %v2475_v54 }
 0x1cf   :  { %2166 = vmatpush3.bf16.msra.mxu0 %v2479_v55  ;;  %2143 = vmatprep.subr.bf16.mxu1 %v2360_v40 }
 0x1d0   :  { %2167 = vmatprep.subr.bf16.mxu0 %v2360_v40 }
 0x1d2   :  { %2145 = vmatpush3.bf16.msra.mxu1 %v2483_v60 }
 0x1d3   :  { %2169 = vmatpush3.bf16.msra.mxu0 %v2487_v61  ;;  %2146 = vmatprep.subr.bf16.mxu1 %v2360_v40 }
 0x1d4   :  { %2170 = vmatprep.subr.bf16.mxu0 %v2360_v40 }
 0x1d6   :  { %2148 = vmatpush3.bf16.msra.mxu1 %v2494_v3 }
 0x1d7   :  { %2172 = vmatpush3.bf16.msra.mxu0 %v2496_v5  ;;  %2149 = vmatprep.subr.bf16.mxu1 %v2360_v40 }
 0x1d8   :  { %2173 = vmatprep.subr.bf16.mxu0 %v2360_v40 }
 0x1da   :  { %2151 = vmatpush3.bf16.msra.mxu1 %v2505_v13 }
 0x1db   :  { %2175 = vmatpush3.bf16.msra.mxu0 %v2507_v15  ;;  %2152 = vmatprep.subr.bf16.mxu1 %v2360_v40 }
 0x1dc   :  { %2176 = vmatprep.subr.bf16.mxu0 %v2360_v40 }
 0x1de   :  { %2154 = vmatpush3.bf16.msra.mxu1 %v2516_v22 }
 0x1df   :  { %2178 = vmatpush3.bf16.msra.mxu0 %v2518_v24  ;;  %2155 = vmatprep.subr.bf16.mxu1 %v2360_v40 }
 0x1e0   :  { %2179 = vmatprep.subr.bf16.mxu0 %v2360_v40 }
 0x1e2   :  { %2157 = vmatpush3.bf16.msra.mxu1 %v2524_v35 }
 0x1e3   :  { %2181 = vmatpush3.bf16.msra.mxu0 %v2526_v38  ;;  %2182 = vmatprep.subr.bf16.mxu1 %v2360_v40 }
 0x1e4   :  { %2206 = vmatprep.subr.bf16.mxu0 %v2360_v40 }
 0x298   :  { %v475_v25 = vpop.f32.mrb[0].mxu1 }
 0x299   :  { %v829_v26 = vpop.f32.mrb[2].mxu0  ;;  %v494_v28 = vadd.f32 %v487_v17, %v475_v25  ;;  %v477_v29 = vpop.f32.mrb[1].mxu1  ;;  %v1060_v17 = vld [vmem:[#allocation6 + $0x148] sm:$0xff]  ;;  %v1066_v25 = vld [vmem:[#allocation6 + $0x178] sm:$0xff] }
 0x29a   :  { %v831_v30 = vpop.f32.mrb[3].mxu0  ;;  %v495_v34 = vadd.f32 %v491_v21, %v477_v29  ;;  %v848_v39 = vadd.f32 %v841_v27, %v829_v26  ;;  %v1064_v21 = vld [vmem:[#allocation6 + $0x168] sm:$0xff] }
 0x29b   :  { %v496_v37 = vmax.f32 %v494_v28, 0.0  ;;  %v849_v46 = vadd.f32 %v845_v43, %v831_v30 }
 0x29c   :  { %v497_v42 = vmax.f32 %v495_v34, 0.0  ;;  %v850_v44 = vmax.f32 %v848_v39, 0.0 }
 0x29d   :  { %499 = vrot.lane.b32.xlu1 %v496_v37, %s2357_s25  ;;  %v851_v47 = vmax.f32 %v849_v46, 0.0 }
 0x29e   :  { %509 = vrot.lane.b32.xlu0 %v497_v42, %s2357_s25 }
 0x2a1   :  { %504 = vrot.lane.b32.xlu1 %v496_v37, %s2362_s4 }
 0x2a2   :  { %853 = vrot.lane.b32.xlu0 %v850_v44, %s2357_s25 }
 0x2a5   :  { %513 = vrot.lane.b32.xlu1 %v497_v42, %s2362_s4 }
 0x2a6   :  { %862 = vrot.lane.b32.xlu0 %v851_v47, %s2357_s25 }
 0x2a9   :  { %857 = vrot.lane.b32.xlu1 %v850_v44, %s2362_s4 }
 0x2ad   :  { %866 = vrot.lane.b32.xlu1 %v851_v47, %s2362_s4 }
 0x30f   :  { %v500_v50 = vpop.permute.xlu1 %499 }
 0x310   :  { %503 = vst.msk [vmem:[#allocation3 + $0x1] sm:$0x1] %vm502_vm4, %v500_v50  ;;  %v510_v51 = vpop.permute.xlu0 %509 }
 0x311   :  { %518 = vst.msk [vmem:[#allocation3 + $0x4] sm:$0x2] %vm517_vm5, %v500_v50  ;;  %520 = vst.msk [vmem:[#allocation3 + $0x6] sm:$0x2] %vm517_vm5, %v510_v51 }
 0x312   :  { %512 = vst.msk [vmem:[#allocation3 + $0x3] sm:$0x1] %vm502_vm4, %v510_v51 }
 0x313   :  { %v505_v52 = vpop.permute.xlu1 %504 }
 0x314   :  { %507 = vst.msk [vmem:[#allocation3 + $0x2] sm:$0x1] %vm502_vm4, %v505_v52  ;;  %v854_v53 = vpop.permute.xlu0 %853 }
 0x315   :  { %519 = vst.msk [vmem:[#allocation3 + $0x5] sm:$0x2] %vm517_vm5, %v505_v52  ;;  %870 = vst.msk [vmem:[#allocation3 + $0x14] sm:$0x2] %vm517_vm5, %v854_v53 }
 0x316   :  { %856 = vst.msk [vmem:[#allocation3 + $0x11] sm:$0x1] %vm502_vm4, %v854_v53 }
 0x317   :  { %v514_v56 = vpop.permute.xlu1 %513 }
 0x318   :  { %516 = vst.msk [vmem:[#allocation3 + $0x4] sm:$0x1] %vm502_vm4, %v514_v56  ;;  %v863_v57 = vpop.permute.xlu0 %862 }
 0x319   :  { %521 = vst.msk [vmem:[#allocation3 + $0x7] sm:$0x2] %vm517_vm5, %v514_v56  ;;  %872 = vst.msk [vmem:[#allocation3 + $0x16] sm:$0x2] %vm517_vm5, %v863_v57 }
 0x31a   :  { %865 = vst.msk [vmem:[#allocation3 + $0x13] sm:$0x1] %vm502_vm4, %v863_v57 }
 0x31b   :  { %v858_v62 = vpop.permute.xlu1 %857 }
 0x31c   :  { %860 = vst.msk [vmem:[#allocation3 + $0x12] sm:$0x1] %vm502_vm4, %v858_v62 }
 0x31d   :  { %871 = vst.msk [vmem:[#allocation3 + $0x15] sm:$0x2] %vm517_vm5, %v858_v62 }
 0x31f   :  { %v867_v2 = vpop.permute.xlu1 %866  ;;  %v874_v6 = vld [vmem:[#allocation3] sm:$0xff] }
 0x320   :  { %v891_v4 = vld [vmem:[#allocation3 + $0x1] sm:$0xff]  ;;  %869 = vst.msk [vmem:[#allocation3 + $0x14] sm:$0x1] %vm502_vm4, %v867_v2  ;;  %1796 = vmatmul.mubr.f32.vlgmr.msra.gmra.mrb[4].mxu0 %v874_v6 }
 0x321   :  { %873 = vst.msk [vmem:[#allocation3 + $0x17] sm:$0x2] %vm517_vm5, %v867_v2  ;;  %1761 = vmatmul.mubr.f32.vlgmr.msra.gmra.mrb[2].mxu1 %v891_v4  ;;  %2208 = vmatpush3.bf16.msra.mxu0 %v2462_v41  ;;  %v1057_v41 = vld [vmem:[#allocation6 + $0x130] sm:$0xff] }
 0x322   :  { %2184 = vmatpush3.bf16.msra.mxu1 %v2554_v63  ;;  %2209 = vmatprep.subr.bf16.mxu0 %v2360_v40  ;;  %v2192_v14 = vpack.c.bf16 %v1058_v11, %v1057_v41 }
 0x323   :  { %2185 = vmatprep.subr.bf16.mxu1 %v2360_v40  ;;  %1830 = vmatprep.mubr.msk.f32.mxu1 %vm2361_vm3, %v2358_v12 }
 0x324   :  { %1865 = vmatprep.mubr.msk.f32.mxu0 %vm2361_vm3, %v2358_v12 }
 0x325   :  { %2211 = vmatpush3.bf16.msra.mxu0 %v2467_v48  ;;  %v2195_v48 = vpack.c.bf16 %v1060_v17, %v1059_v16 }
 0x326   :  { %2187 = vmatpush3.bf16.msra.mxu1 %v2186_v7  ;;  %2212 = vmatprep.subr.bf16.mxu0 %v2360_v40 }
 0x327   :  { %2188 = vmatprep.subr.bf16.mxu1 %v2360_v40 }
 0x328   :  { %v1259_v26 = vld [vmem:[#allocation3 + $0x11] sm:$0xff] }
 0x329   :  { %2214 = vmatpush3.bf16.msra.mxu0 %v2475_v54  ;;  %v2198_v54 = vpack.c.bf16 %v1062_v19, %v1061_v18 }
 0x32a   :  { %2190 = vmatpush3.bf16.msra.mxu1 %v2189_v10  ;;  %2215 = vmatprep.subr.bf16.mxu0 %v2360_v40 }
 0x32b   :  { %2191 = vmatprep.subr.bf16.mxu1 %v2360_v40 }
 0x32d   :  { %2217 = vmatpush3.bf16.msra.mxu0 %v2483_v60  ;;  %v2201_v60 = vpack.c.bf16 %v1064_v21, %v1063_v20 }
 0x32e   :  { %2193 = vmatpush3.bf16.msra.mxu1 %v2192_v14  ;;  %2218 = vmatprep.subr.bf16.mxu0 %v2360_v40 }
 0x32f   :  { %2194 = vmatprep.subr.bf16.mxu1 %v2360_v40 }
 0x331   :  { %2220 = vmatpush3.bf16.msra.mxu0 %v2494_v3  ;;  %v2204_v3 = vpack.c.bf16 %v1066_v25, %v1065_v23 }
 0x332   :  { %2196 = vmatpush3.bf16.msra.mxu1 %v2195_v48  ;;  %2221 = vmatprep.subr.bf16.mxu0 %v2360_v40 }
 0x333   :  { %2197 = vmatprep.subr.bf16.mxu1 %v2360_v40 }
 0x335   :  { %2223 = vmatpush3.bf16.msra.mxu0 %v2505_v13  ;;  %v1049_v13 = vld [vmem:[#allocation3 + $0x2] sm:$0xff] }
 0x336   :  { %2199 = vmatpush3.bf16.msra.mxu1 %v2198_v54  ;;  %2224 = vmatprep.subr.bf16.mxu0 %v2360_v40 }
 0x337   :  { %2200 = vmatprep.subr.bf16.mxu1 %v2360_v40 }
 0x339   :  { %2226 = vmatpush3.bf16.msra.mxu0 %v2516_v22 }
 0x33a   :  { %2202 = vmatpush3.bf16.msra.mxu1 %v2201_v60  ;;  %2227 = vmatprep.subr.bf16.mxu0 %v2360_v40 }
 0x33b   :  { %2203 = vmatprep.subr.bf16.mxu1 %v2360_v40 }
 0x33d   :  { %2229 = vmatpush3.bf16.msra.mxu0 %v2524_v35 }
 0x33e   :  { %2205 = vmatpush3.bf16.msra.mxu1 %v2204_v3  ;;  %2254 = vmatprep.subr.bf16.mxu0 %v2360_v40 }
 0x33f   :  { %2230 = vmatprep.subr.bf16.mxu1 %v2360_v40 }
 0x340   :  { %1866 = vmatmul.mubr.f32.vlgmr.msra.gmra.mrb[6].mxu0 %v1259_v26 }
 0x341   :  { %1831 = vmatmul.mubr.f32.vlgmr.msra.gmra.mrb[4].mxu1 %v1049_v13  ;;  %2256 = vmatpush3.bf16.msra.mxu0 %v2554_v63 }
 0x342   :  { %2232 = vmatpush3.bf16.msra.mxu1 %v2464_v45  ;;  %2257 = vmatprep.subr.bf16.mxu0 %v2360_v40  ;;  %v1416_v45 = vld [vmem:[#allocation3 + $0x12] sm:$0xff] }
 0x343   :  { %2233 = vmatprep.subr.bf16.mxu1 %v2360_v40  ;;  %1900 = vmatprep.mubr.msk.f32.mxu1 %vm2361_vm3, %v2358_v12 }
 0x344   :  { %1935 = vmatprep.mubr.msk.f32.mxu0 %vm2361_vm3, %v2358_v12  ;;  %v1242_v12 = vld [vmem:[#allocation3 + $0x10] sm:$0xff] }
 0x345   :  { %2259 = vmatpush3.bf16.msra.mxu0 %v2186_v7 }
 0x346   :  { %2235 = vmatpush3.bf16.msra.mxu1 %v2471_v49  ;;  %2260 = vmatprep.subr.bf16.mxu0 %v2360_v40 }
 0x347   :  { %2236 = vmatprep.subr.bf16.mxu1 %v2360_v40 }
 0x349   :  { %2262 = vmatpush3.bf16.msra.mxu0 %v2189_v10 }
 0x34a   :  { %2238 = vmatpush3.bf16.msra.mxu1 %v2479_v55  ;;  %2263 = vmatprep.subr.bf16.mxu0 %v2360_v40 }
 0x34b   :  { %2239 = vmatprep.subr.bf16.mxu1 %v2360_v40 }
 0x34d   :  { %2265 = vmatpush3.bf16.msra.mxu0 %v2192_v14 }
 0x34e   :  { %2241 = vmatpush3.bf16.msra.mxu1 %v2487_v61  ;;  %2266 = vmatprep.subr.bf16.mxu0 %v2360_v40 }
 0x34f   :  { %2242 = vmatprep.subr.bf16.mxu1 %v2360_v40 }
 0x351   :  { %2268 = vmatpush3.bf16.msra.mxu0 %v2195_v48 }
 0x352   :  { %2244 = vmatpush3.bf16.msra.mxu1 %v2496_v5  ;;  %2269 = vmatprep.subr.bf16.mxu0 %v2360_v40 }
 0x353   :  { %2245 = vmatprep.subr.bf16.mxu1 %v2360_v40 }
 0x355   :  { %2271 = vmatpush3.bf16.msra.mxu0 %v2198_v54 }
 0x356   :  { %2247 = vmatpush3.bf16.msra.mxu1 %v2507_v15  ;;  %2272 = vmatprep.subr.bf16.mxu0 %v2360_v40 }
 0x357   :  { %2248 = vmatprep.subr.bf16.mxu1 %v2360_v40 }
 0x359   :  { %2274 = vmatpush3.bf16.msra.mxu0 %v2201_v60 }
 0x35a   :  { %2250 = vmatpush3.bf16.msra.mxu1 %v2518_v24  ;;  %2275 = vmatprep.subr.bf16.mxu0 %v2360_v40  ;;  %v1613_v24 = vld [vmem:[%s2891_s6] ss:$0 sm:$0xff] }
 0x35b   :  { %2251 = vmatprep.subr.bf16.mxu1 %v2360_v40 }
 0x35d   :  { %2277 = vmatpush3.bf16.msra.mxu0 %v2204_v3 }
 0x35e   :  { %2253 = vmatpush3.bf16.msra.mxu1 %v2526_v38 }
 0x360   :  { %1936 = vmatmul.mubr.f32.vlgmr.msra.gmra.mrb[8].mxu0 %v1416_v45 }
 0x361   :  { %1901 = vmatmul.mubr.f32.vlgmr.msra.gmra.mrb[6].mxu1 %v1242_v12 }
 0x3f3   :  { %v1045_v55 = vpop.f32.mrb[4].mxu0 }
 0x3f4   :  { %v975_v49 = vpop.f32.mrb[2].mxu1  ;;  %v1797_v15 = vpop.f32.mrb[5].mxu0 }
 0x3f5   :  { %v1046_v61 = vadd.f32 %v1045_v55, %v975_v49  ;;  %v1762_v5 = vpop.f32.mrb[3].mxu1 }
 0x413   :  { %v1342_v27 = vpop.f32.mrb[6].mxu0 }
 0x414   :  { %v1133_v22 = vpop.f32.mrb[4].mxu1  ;;  %v1867_v29 = vpop.f32.mrb[7].mxu0 }
 0x415   :  { %v1137_v28 = vadd.f32 %v1133_v22, %v1046_v61  ;;  %v1832_v40 = vpop.f32.mrb[5].mxu1 }
 0x417   :  { %v1145_v30 = vadd.f32 %v1613_v24, %v1137_v28 }
 0x419   :  { %2300 = vtanh.f32 %v1145_v30 }
 0x423   :  { %v2301_v31 = vpop.eup %2300 }
 0x424   :  { %1154 = vrot.lane.b32.xlu1 %v2301_v31, %s2363_s18  ;;  %1150 = vrot.lane.b32.xlu0 %v2301_v31, %s2364_s19  ;;  %v1196_v32 = vrot.slane %v2301_v31, 4  ;;  %1148 = vst.msk [vmem:[%s2892_s7] sm:$0x1] %vm1147_vm6, %v2301_v31  ;;  %v2623_v33 = vrot.slane %v2301_v31, 1  ;;  %v2633_v34 = vrot.slane %v2301_v31, 2  ;;  %v2641_v35 = vrot.slane %v2301_v31, 5 }
 0x425   :  { %v2647_v43 = vrot.slane %v2301_v31, 6  ;;  %v1182_v47 = vrot.slane %v2301_v31, 3  ;;  %v1229_v50 = vrot.slane %v2301_v31, 7 }
 0x426   :  { %1198 = vst.msk [vmem:[%s2892_s7 + $0x8] sm:$0x1] %vm1147_vm6, %v1196_v32 }
 0x428   :  { %1166 = vrot.lane.b32.xlu1 %v2623_v33, %s2364_s19  ;;  %1159 = vrot.lane.b32.xlu0 %v2623_v33, %s2365_s23 }
 0x42c   :  { %1176 = vrot.lane.b32.xlu1 %v2633_v34, %s2365_s23  ;;  %1171 = vrot.lane.b32.xlu0 %v2633_v34, %s2363_s18 }
 0x430   :  { %1203 = vrot.lane.b32.xlu1 %v1196_v32, %s2363_s18  ;;  %1199 = vrot.lane.b32.xlu0 %v1196_v32, %s2364_s19 }
 0x433   :  { %v1499_v37 = vpop.f32.mrb[8].mxu0 }
 0x434   :  { %1214 = vrot.lane.b32.xlu1 %v2641_v35, %s2364_s19  ;;  %1208 = vrot.lane.b32.xlu0 %v2641_v35, %s2365_s23  ;;  %v1412_v36 = vpop.f32.mrb[6].mxu1  ;;  %v1937_v42 = vpop.f32.mrb[9].mxu0 }
 0x435   :  { %v1413_v38 = vadd.f32 %v1412_v36, %v1342_v27  ;;  %v1902_v39 = vpop.f32.mrb[7].mxu1 }
 0x437   :  { %v1503_v44 = vadd.f32 %v1499_v37, %v1413_v38 }
 0x438   :  { %1223 = vrot.lane.b32.xlu1 %v2647_v43, %s2365_s23  ;;  %1219 = vrot.lane.b32.xlu0 %v2647_v43, %s2363_s18 }
 0x439   :  { %v1511_v46 = vadd.f32 %v1613_v24, %v1503_v44 }
 0x43b   :  { %2302 = vtanh.f32 %v1511_v46 }
 0x43c   :  { %1188 = vrot.lane.b32.xlu1 %v1182_v47, %s2363_s18  ;;  %1183 = vrot.lane.b32.xlu0 %v1182_v47, %s2364_s19 }
 0x440   :  { %1230 = vrot.lane.b32.xlu1 %v1229_v50, %s2364_s19  ;;  %1192 = vrot.lane.b32.xlu0 %v1182_v47, %s2365_s23 }
 0x444   :  { %1238 = vrot.lane.b32.xlu1 %v1229_v50, %s2365_s23  ;;  %1234 = vrot.lane.b32.xlu0 %v1229_v50, %s2363_s18 }
 0x445   :  { %v2303_v51 = vpop.eup %2302 }
 0x446   :  { %v1558_v52 = vrot.slane %v2303_v51, 4  ;;  %1513 = vst.msk [vmem:[%s2892_s7 + $0x3] sm:$0x1] %vm1147_vm6, %v2303_v51  ;;  %v2671_v53 = vrot.slane %v2303_v51, 1  ;;  %v2677_v56 = vrot.slane %v2303_v51, 5  ;;  %v2683_v57 = vrot.slane %v2303_v51, 2 }
 0x447   :  { %v2689_v58 = vrot.slane %v2303_v51, 6  ;;  %v1545_v59 = vrot.slane %v2303_v51, 3  ;;  %v1591_v62 = vrot.slane %v2303_v51, 7 }
 0x448   :  { %1519 = vrot.lane.b32.xlu1 %v2303_v51, %s2363_s18  ;;  %1515 = vrot.lane.b32.xlu0 %v2303_v51, %s2364_s19  ;;  %1560 = vst.msk [vmem:[%s2892_s7 + $0xb] sm:$0x1] %vm1147_vm6, %v1558_v52 }
 0x44c   :  { %1565 = vrot.lane.b32.xlu1 %v1558_v52, %s2363_s18  ;;  %1561 = vrot.lane.b32.xlu0 %v1558_v52, %s2364_s19 }
 0x450   :  { %1530 = vrot.lane.b32.xlu1 %v2671_v53, %s2364_s19  ;;  %1524 = vrot.lane.b32.xlu0 %v2671_v53, %s2365_s23 }
 0x454   :  { %1576 = vrot.lane.b32.xlu1 %v2677_v56, %s2364_s19  ;;  %1570 = vrot.lane.b32.xlu0 %v2677_v56, %s2365_s23 }
 0x458   :  { %1539 = vrot.lane.b32.xlu1 %v2683_v57, %s2365_s23  ;;  %1535 = vrot.lane.b32.xlu0 %v2683_v57, %s2363_s18 }
 0x45c   :  { %1585 = vrot.lane.b32.xlu1 %v2689_v58, %s2365_s23  ;;  %1581 = vrot.lane.b32.xlu0 %v2689_v58, %s2363_s18 }
 0x460   :  { %1550 = vrot.lane.b32.xlu1 %v1545_v59, %s2363_s18  ;;  %1546 = vrot.lane.b32.xlu0 %v1545_v59, %s2364_s19 }
 0x464   :  { %1592 = vrot.lane.b32.xlu1 %v1591_v62, %s2364_s19  ;;  %1554 = vrot.lane.b32.xlu0 %v1545_v59, %s2365_s23 }
 0x468   :  { %1600 = vrot.lane.b32.xlu1 %v1591_v62, %s2365_s23  ;;  %1596 = vrot.lane.b32.xlu0 %v1591_v62, %s2363_s18 }
 0x496   :  { %v1155_v63 = vpop.permute.xlu1 %1154  ;;  %v1151_v0 = vpop.permute.xlu0 %1150 }
 0x497   :  { %1157 = vst.msk [vmem:[%s2892_s7 + $0x2] sm:$0x1] %vm1147_vm6, %v1155_v63  ;;  %1153 = vst.msk [vmem:[%s2892_s7 + $0x1] sm:$0x1] %vm1147_vm6, %v1151_v0 }
 0x498   :  { %1165 = vst.msk [vmem:[%s2892_s7 + $0x1] sm:$0x1] %vm1162_vm7, %v2623_v33 }
 0x49a   :  { %v1167_v1 = vpop.permute.xlu1 %1166  ;;  %v1160_v2 = vpop.permute.xlu0 %1159 }
 0x49b   :  { %1169 = vst.msk [vmem:[%s2892_s7 + $0x2] sm:$0x1] %vm1162_vm7, %v1167_v1  ;;  %1163 = vst.msk [vmem:[%s2892_s7] sm:$0x1] %vm1162_vm7, %v1160_v2 }
 0x49c   :  { %1181 = vst.msk [vmem:[%s2892_s7 + $0x2] sm:$0x1] %vm1174_vm8, %v2633_v34 }
 0x49e   :  { %v1177_v4 = vpop.permute.xlu1 %1176  ;;  %v1172_v6 = vpop.permute.xlu0 %1171 }
 0x49f   :  { %1179 = vst.msk [vmem:[%s2892_s7 + $0x1] sm:$0x1] %vm1174_vm8, %v1177_v4  ;;  %1175 = vst.msk [vmem:[%s2892_s7] sm:$0x1] %vm1174_vm8, %v1172_v6 }
 0x4a2   :  { %v1204_v7 = vpop.permute.xlu1 %1203  ;;  %v1200_v8 = vpop.permute.xlu0 %1199 }
 0x4a3   :  { %1206 = vst.msk [vmem:[%s2892_s7 + $0xa] sm:$0x1] %vm1147_vm6, %v1204_v7  ;;  %1202 = vst.msk [vmem:[%s2892_s7 + $0x9] sm:$0x1] %vm1147_vm6, %v1200_v8 }
 0x4a4   :  { %1213 = vst.msk [vmem:[%s2892_s7 + $0x9] sm:$0x1] %vm1162_vm7, %v2641_v35 }
 0x4a6   :  { %v1215_v9 = vpop.permute.xlu1 %1214  ;;  %v1209_v10 = vpop.permute.xlu0 %1208 }
 0x4a7   :  { %1217 = vst.msk [vmem:[%s2892_s7 + $0xa] sm:$0x1] %vm1162_vm7, %v1215_v9  ;;  %1211 = vst.msk [vmem:[%s2892_s7 + $0x8] sm:$0x1] %vm1162_vm7, %v1209_v10 }
 0x4a8   :  { %1228 = vst.msk [vmem:[%s2892_s7 + $0xa] sm:$0x1] %vm1174_vm8, %v2647_v43 }
 0x4aa   :  { %v1224_v41 = vpop.permute.xlu1 %1223  ;;  %v1220_v11 = vpop.permute.xlu0 %1219 }
 0x4ab   :  { %1226 = vst.msk [vmem:[%s2892_s7 + $0x9] sm:$0x1] %vm1174_vm8, %v1224_v41  ;;  %1222 = vst.msk [vmem:[%s2892_s7 + $0x8] sm:$0x1] %vm1174_vm8, %v1220_v11 }
 0x4ae   :  { %v1189_v14 = vpop.permute.xlu1 %1188  ;;  %v1184_v16 = vpop.permute.xlu0 %1183 }
 0x4af   :  { %1191 = vst.msk [vmem:[%s2892_s7 + $0x1] sm:$0x1] %vm1186_vm9, %v1189_v14  ;;  %1187 = vst.msk [vmem:[%s2892_s7] sm:$0x1] %vm1186_vm9, %v1184_v16 }
 0x4b2   :  { %v1231_v17 = vpop.permute.xlu1 %1230  ;;  %v1193_v48 = vpop.permute.xlu0 %1192 }
 0x4b3   :  { %1233 = vst.msk [vmem:[%s2892_s7 + $0x8] sm:$0x1] %vm1186_vm9, %v1231_v17  ;;  %1195 = vst.msk [vmem:[%s2892_s7 + $0x2] sm:$0x1] %vm1186_vm9, %v1193_v48 }
 0x4b6   :  { %v1239_v18 = vpop.permute.xlu1 %1238  ;;  %v1235_v19 = vpop.permute.xlu0 %1234 }
 0x4b7   :  { %1241 = vst.msk [vmem:[%s2892_s7 + $0xa] sm:$0x1] %vm1186_vm9, %v1239_v18  ;;  %1237 = vst.msk [vmem:[%s2892_s7 + $0x9] sm:$0x1] %vm1186_vm9, %v1235_v19 }
 0x4ba   :  { %v1520_v54 = vpop.permute.xlu1 %1519  ;;  %v1516_v20 = vpop.permute.xlu0 %1515 }
 0x4bb   :  { %1522 = vst.msk [vmem:[%s2892_s7 + $0x5] sm:$0x1] %vm1147_vm6, %v1520_v54  ;;  %1518 = vst.msk [vmem:[%s2892_s7 + $0x4] sm:$0x1] %vm1147_vm6, %v1516_v20 }
 0x4bc   :  { %1529 = vst.msk [vmem:[%s2892_s7 + $0x4] sm:$0x1] %vm1162_vm7, %v2671_v53 }
 0x4be   :  { %v1566_v21 = vpop.permute.xlu1 %1565  ;;  %v1562_v60 = vpop.permute.xlu0 %1561 }
 0x4bf   :  { %1568 = vst.msk [vmem:[%s2892_s7 + $0xd] sm:$0x1] %vm1147_vm6, %v1566_v21  ;;  %1564 = vst.msk [vmem:[%s2892_s7 + $0xc] sm:$0x1] %vm1147_vm6, %v1562_v60 }
 0x4c0   :  { %1575 = vst.msk [vmem:[%s2892_s7 + $0xc] sm:$0x1] %vm1162_vm7, %v2677_v56 }
 0x4c2   :  { %v1531_v23 = vpop.permute.xlu1 %1530  ;;  %v1525_v25 = vpop.permute.xlu0 %1524 }
 0x4c3   :  { %1533 = vst.msk [vmem:[%s2892_s7 + $0x5] sm:$0x1] %vm1162_vm7, %v1531_v23  ;;  %1527 = vst.msk [vmem:[%s2892_s7 + $0x3] sm:$0x1] %vm1162_vm7, %v1525_v25 }
 0x4c4   :  { %1544 = vst.msk [vmem:[%s2892_s7 + $0x5] sm:$0x1] %vm1174_vm8, %v2683_v57 }
 0x4c6   :  { %v1577_v3 = vpop.permute.xlu1 %1576  ;;  %v1571_v13 = vpop.permute.xlu0 %1570 }
 0x4c7   :  { %1579 = vst.msk [vmem:[%s2892_s7 + $0xd] sm:$0x1] %vm1162_vm7, %v1577_v3  ;;  %1573 = vst.msk [vmem:[%s2892_s7 + $0xb] sm:$0x1] %vm1162_vm7, %v1571_v13 }
 0x4c8   :  { %1590 = vst.msk [vmem:[%s2892_s7 + $0xd] sm:$0x1] %vm1174_vm8, %v2689_v58 }
 0x4ca   :  { %v1540_v26 = vpop.permute.xlu1 %1539  ;;  %v1536_v12 = vpop.permute.xlu0 %1535 }
 0x4cb   :  { %1542 = vst.msk [vmem:[%s2892_s7 + $0x4] sm:$0x1] %vm1174_vm8, %v1540_v26  ;;  %1538 = vst.msk [vmem:[%s2892_s7 + $0x3] sm:$0x1] %vm1174_vm8, %v1536_v12 }
 0x4ce   :  { %v1586_v45 = vpop.permute.xlu1 %1585  ;;  %v1582_v49 = vpop.permute.xlu0 %1581 }
 0x4cf   :  { %1588 = vst.msk [vmem:[%s2892_s7 + $0xc] sm:$0x1] %vm1174_vm8, %v1586_v45  ;;  %1584 = vst.msk [vmem:[%s2892_s7 + $0xb] sm:$0x1] %vm1174_vm8, %v1582_v49 }
 0x4d2   :  { %v1551_v55 = vpop.permute.xlu1 %1550  ;;  %v1547_v61 = vpop.permute.xlu0 %1546 }
 0x4d3   :  { %1553 = vst.msk [vmem:[%s2892_s7 + $0x4] sm:$0x1] %vm1186_vm9, %v1551_v55  ;;  %1549 = vst.msk [vmem:[%s2892_s7 + $0x3] sm:$0x1] %vm1186_vm9, %v1547_v61 }
 0x4d6   :  { %v1593_v5 = vpop.permute.xlu1 %1592  ;;  %v1555_v15 = vpop.permute.xlu0 %1554 }
 0x4d7   :  { %1595 = vst.msk [vmem:[%s2892_s7 + $0xb] sm:$0x1] %vm1186_vm9, %v1593_v5  ;;  %1557 = vst.msk [vmem:[%s2892_s7 + $0x5] sm:$0x1] %vm1186_vm9, %v1555_v15 }
 0x4da   :  { %v1601_v22 = vpop.permute.xlu1 %1600  ;;  %v1597_v24 = vpop.permute.xlu0 %1596 }
 0x4db   :  { %1603 = vst.msk [vmem:[%s2892_s7 + $0xd] sm:$0x1] %vm1186_vm9, %v1601_v22  ;;  %1599 = vst.msk [vmem:[%s2892_s7 + $0xc] sm:$0x1] %vm1186_vm9, %v1597_v24 }
 0x4dc   :  { %1608 = vsyncpa [#allocation5], 1 }
 0x4dd   :  { %1609 = vsyncpa [#allocation7], 1 }

</bundles_post_ra>
